<compile_context>
chip_gen: v6e
topology: v6e:2x2x1
jax: 0.10.0
libtpu: 0.0.40
codegen_flags: <defaults>
</compile_context>

<pallas_src>
import functools

import numpy as np
import jax
import jax.numpy as jnp
from jax.experimental import pallas as pl
from jax.experimental.pallas import tpu as pltpu


# ---------------------------------------------------------------------------
# Deterministic parameter construction (mirrors the torch __init__ semantics)
# ---------------------------------------------------------------------------
def sparse_tensor_init(rng, M, N, C=1):
    """M x N dense matrix, C non-zeros per row, uniform(-1, 1)."""
    W = np.zeros((M, N), dtype=np.float32)
    for i in range(M):
        idx = rng.choice(N, size=C, replace=False)
        W[i, idx] = 2.0 * rng.random(C).astype(np.float32) - 1.0
    return W


def sparse_recurrent_tensor_init(rng, M, C=1):
    """M x M dense matrix, C non-zeros per column, uniform(-1, 1)."""
    W = np.zeros((M, M), dtype=np.float32)
    for i in range(M):
        idx = rng.choice(M, size=C, replace=False)
        W[idx, i] = 2.0 * rng.random(C).astype(np.float32) - 1.0
    return W


def spectral_norm_scaling(W, rho_desired):
    e = np.linalg.eigvals(W)
    rho_curr = np.max(np.abs(e))
    return (W * (rho_desired / rho_curr)).astype(np.float32)


def make_reservoir_params(input_size, units, input_scaling=1.0,
                          spectral_radius=0.99, connectivity_input=10,
                          connectivity_recurrent=10, bias_scaling=None,
                          seed=0):
    rng = np.random.default_rng(seed)
    kernel = sparse_tensor_init(rng, input_size, units, connectivity_input)
    kernel = kernel * input_scaling
    W = sparse_recurrent_tensor_init(rng, units, C=connectivity_recurrent)
    # leaky == 1 -> effective_rescaling branch skipped; sparse uniform case:
    W = spectral_norm_scaling(W, spectral_radius)
    if bias_scaling is None:
        bias_scaling = input_scaling
    bias = (2.0 * rng.random(units).astype(np.float32) - 1.0) * bias_scaling
    return (jnp.asarray(kernel, jnp.float32),
            jnp.asarray(W, jnp.float32),
            jnp.asarray(bias, jnp.float32))          # (U,)


# ---------------------------------------------------------------------------
# Pallas kernel: one grid step == one (batch_block, time_block) tile
# ---------------------------------------------------------------------------
def _reservoir_recurrent_kernel(*refs, leaky, block_t, has_h0, nonlin):
    """Serial recurrence over `block_t` timesteps of one batch tile.

    Refs (in order):
      u_ref   : (block_t, block_b, U)  time-major  x @ W_in + bias
      h0_ref  : (block_b, U)           only present when has_h0
      wrec_ref: (U, U)                 recurrent kernel (bf16 or f32)
      hs_ref  : (block_b, block_t, U)  batch-major output hidden states
      h_scr   : (block_b, U) f32       hidden state, persists across time blocks
    """
    if has_h0:
        u_ref, h0_ref, wrec_ref, hs_ref, h_scr = refs
    else:
        u_ref, wrec_ref, hs_ref, h_scr = refs

    @pl.when(pl.program_id(1) == 0)          # first time-block of this batch tile
    def _():
        if has_h0:
            h_scr[...] = h0_ref[...].astype(jnp.float32)
        else:
            h_scr[...] = jnp.zeros_like(h_scr)

    mm_dtype = wrec_ref.dtype
    h = h_scr[...]
    # Fully unrolled inner recurrence (block_t is a small static int).
    for i in range(block_t):
        # NOTE: wrec_ref[...] is deliberately re-read from VMEM every step.
        # Hoisting it would keep the whole UxU tile live in vregs across the
        # unrolled loop (register-file sized already at U=256) and force
        # spills through the single vst slot; per-step vld has slack.
        state = jnp.dot(h.astype(mm_dtype), wrec_ref[...],
                        preferred_element_type=jnp.float32)
        pre = u_ref[i].astype(jnp.float32) + state
        out = jnp.tanh(pre) if nonlin == "tanh" else pre
        if leaky == 1.0:                      # static special case (default)
            h = out
        else:
            h = h * (1.0 - leaky) + out * leaky
        # Batch-major store: static sublane index, off the serial MXU->tanh
        # critical path.  Removes the wrapper-side (T,B,U)->(B,T,U) transpose.
        hs_ref[:, i, :] = h.astype(hs_ref.dtype)
    h_scr[...] = h


_DT = {"float32": (jnp.float32, 4), "bfloat16": (jnp.bfloat16, 2)}


def _round_up(x, m):
    return ((x + m - 1) // m) * m


def _device_vmem_bytes():
    try:
        return int(pltpu.get_tpu_info().vmem_capacity_bytes)
    except Exception:
        return 64 * 1024 * 1024        # conservative: v7x per-TensorCore VMEM


@functools.partial(
    jax.jit,
    static_argnames=("leaky", "nonlin", "block_t", "block_b",
                     "matmul_dtype", "u_dtype"))
def reservoir_layer_pallas(x, w_in, w_rec, bias, h0=None, *, leaky=1.0,
                           nonlin="tanh", block_t=None, block_b=None,
                           matmul_dtype="bfloat16", u_dtype="float32"):
    """x: (B, T, In). Returns (hs (B, T, U), h_last (B, U)) like the torch module."""
    B, T, In = x.shape
    U = w_in.shape[1]
    mm_dt, mm_bytes = _DT[matmul_dtype]
    u_dt, u_bytes = _DT[u_dtype]

    x = x.astype(jnp.float32)
    w_in = w_in.astype(jnp.float32)
    w_rec = w_rec.astype(jnp.float32)
    bias = bias.astype(jnp.float32)
    has_h0 = h0 is not None
    if has_h0:
        h0 = h0.astype(jnp.float32)

    # ---- alignment padding: lane-dense last dim, sublane-aligned batch ----
    U_pad = _round_up(U, 128)
    B_pad = _round_up(B, 8)
    if U_pad != U:
        w_in = jnp.pad(w_in, ((0, 0), (0, U_pad - U)))
        w_rec = jnp.pad(w_rec, ((0, U_pad - U), (0, U_pad - U)))
        bias = jnp.pad(bias, (0, U_pad - U))
        if has_h0:
            h0 = jnp.pad(h0, ((0, 0), (0, U_pad - U)))
    if B_pad != B:
        x = jnp.pad(x, ((0, B_pad - B), (0, 0), (0, 0)))
        if has_h0:
            h0 = jnp.pad(h0, ((0, B_pad - B), (0, 0)))

    # ---- hoisted input projection: ONE big MXU matmul, emitted time-major ----
    u_tm = jnp.einsum("bti,iu->tbu", x, w_in,
                      preferred_element_type=jnp.float32) + bias    # (T,B,U)
    u_tm = u_tm.astype(u_dt)        # optional bf16 streaming knob (v5e/v6e)

    w_rec_c = w_rec.astype(mm_dt)   # bf16 weights: native MXU rate, half VMEM

    # ---- time blocking ----
    if block_t is None:
        block_t = min(16, _round_up(max(T, 1), 8))
    block_t = _round_up(block_t, 8)         # sublane dim of the hs out-block
    T_pad = _round_up(T, block_t)
    if T_pad != T:
        u_tm = jnp.pad(u_tm, ((0, T_pad - T), (0, 0), (0, 0)))
    nt = T_pad // block_t

    # ---- batch blocking under an explicit VMEM budget ----
    def vmem_need(bb):
        blk = block_t * bb * U_pad
        need = 2 * blk * (u_bytes + 4)              # u + hs, double-buffered
        need += 2 * U_pad * U_pad * mm_bytes        # W_rec (2 buffers)
        if has_h0:
            need += 2 * bb * U_pad * 4
        need += bb * U_pad * 4                      # h scratch
        return need

    vmem_cap = _device_vmem_bytes()
    budget = int(0.8 * vmem_cap)

    if block_b is None:
        cands = [d for d in range(min(B_pad, 256), 0, -1)
                 if B_pad % d == 0 and d % 8 == 0]
        # Prefer >=2 batch tiles so the "parallel" batch axis can shard across
        # both TensorCores on v7x, but never shrink a tile below 64 MXU rows.
        pref = [d for d in cands if B_pad // d >= 2 and d >= 64]
        block_b = None
        for d in pref + cands:
            if vmem_need(d) <= budget:
                block_b = d
                break
        if block_b is None:
            block_b = cands[-1]
    assert B_pad % block_b == 0, "block_b must divide the (padded) batch"
    nb = B_pad // block_b

    vmem_limit = int(min(max(int(1.25 * vmem_need(block_b)), 32 * 1024 * 1024),
                         int(0.9 * vmem_cap)))

    # ---- specs ----
    in_specs = [pl.BlockSpec((block_t, block_b, U_pad),
                             lambda b, t: (t, b, 0))]          # u, time-major
    inputs = [u_tm]
    if has_h0:
        in_specs.append(pl.BlockSpec((block_b, U_pad), lambda b, t: (b, 0)))
        inputs.append(h0)
    in_specs.append(pl.BlockSpec((U_pad, U_pad), lambda b, t: (0, 0)))  # W_rec
    inputs.append(w_rec_c)

    hs_full = pl.pallas_call(
        functools.partial(_reservoir_recurrent_kernel,
                          leaky=float(leaky), block_t=block_t,
                          has_h0=has_h0, nonlin=nonlin),
        out_shape=jax.ShapeDtypeStruct((B_pad, T_pad, U_pad), jnp.float32),
        grid_spec=pltpu.PrefetchScalarGridSpec(
            num_scalar_prefetch=0,
            grid=(nb, nt),                                     # (batch, time)
            in_specs=in_specs,
            out_specs=pl.BlockSpec((block_b, block_t, U_pad),
                                   lambda b, t: (b, t, 0)),    # batch-major
            scratch_shapes=[pltpu.VMEM((block_b, U_pad), jnp.float32)]),
        compiler_params=pltpu.CompilerParams(
            dimension_semantics=("parallel", "arbitrary"),     # batch ||, time serial
            vmem_limit_bytes=vmem_limit),
    )(*inputs)

    hs = hs_full[:B, :T, :U]          # already batch-major: no wrapper transpose
    return hs, hs[:, -1]


# ---------------------------------------------------------------------------
# Pure-JAX reference (mirrors the torch per-timestep cell) for correctness
# ---------------------------------------------------------------------------
def reservoir_layer_ref(x, w_in, w_rec, bias, h0, leaky=1.0, nonlin="tanh",
                        matmul_dtype=jnp.float32):
    w_rec_c = w_rec.astype(matmul_dtype)

    def step(h, xt):
        pre = (xt @ w_in + bias
               + jnp.dot(h.astype(matmul_dtype), w_rec_c,
                         preferred_element_type=jnp.float32))
        out = jnp.tanh(pre) if nonlin == "tanh" else pre
        h_new = h * (1.0 - leaky) + out * leaky
        return h_new, h_new

    h_last, hs = jax.lax.scan(step, h0.astype(jnp.float32),
                              jnp.transpose(x, (1, 0, 2)).astype(jnp.float32))
    return jnp.transpose(hs, (1, 0, 2)), h_last


if __name__ == "__main__":
    # Small but TPU-aligned shapes (B multiple of 8, U multiple of 128).
    B, T, In, U = 8, 16, 4, 128

    w_in, w_rec, bias = make_reservoir_params(
        input_size=In, units=U, input_scaling=1.0, spectral_radius=0.99,
        connectivity_input=10, connectivity_recurrent=10, seed=0)

    key = jax.random.PRNGKey(0)
    x = jax.random.normal(key, (B, T, In), dtype=jnp.float32)
    h0_zero = jnp.zeros((B, U), jnp.float32)

    # 1) Exact-semantics path (f32 recurrent matmul, h0=None) vs. reference.
    hs32, hl32 = reservoir_layer_pallas(x, w_in, w_rec, bias,
                                        matmul_dtype="float32")
    jax.block_until_ready((hs32, hl32))
    hs_ref, hl_ref = reservoir_layer_ref(x, w_in, w_rec, bias, h0_zero)
    np.testing.assert_allclose(np.asarray(hs32), np.asarray(hs_ref),
                               rtol=1e-4, atol=1e-4)
    np.testing.assert_allclose(np.asarray(hl32), np.asarray(hl_ref),
                               rtol=1e-4, atol=1e-4)

    # 2) Explicit-h0 path (f32) vs. reference.
    h0r = 0.1 * jax.random.normal(jax.random.PRNGKey(1), (B, U), jnp.float32)
    hs_h0, _ = reservoir_layer_pallas(x, w_in, w_rec, bias, h0r,
                                      matmul_dtype="float32")
    jax.block_until_ready(hs_h0)
    hs_ref_h0, _ = reservoir_layer_ref(x, w_in, w_rec, bias, h0r)
    np.testing.assert_allclose(np.asarray(hs_h0), np.asarray(hs_ref_h0),
                               rtol=1e-4, atol=1e-4)

    # 3) Default fast path (bf16 recurrent weights, f32 accumulation/state).
    #    Loose tolerance: bf16 weight rounding perturbs the spectral-radius-
    #    0.99 reservoir trajectory at the bf16-precision level; the tight
    #    semantic check is (1)/(2) above.
    hs_bf, hl_bf = reservoir_layer_pallas(x, w_in, w_rec, bias)
    jax.block_until_ready((hs_bf, hl_bf))
    np.testing.assert_allclose(np.asarray(hs_bf), np.asarray(hs_ref),
                               rtol=0.1, atol=0.1)
    np.testing.assert_allclose(np.asarray(hl_bf), np.asarray(hl_ref),
                               rtol=0.1, atol=0.1)

    print("KERNEL_OK")
</pallas_src>

<mosaic_0001>
module attributes {stable_mosaic.version = 11 : i64} {
  func.func @_reservoir_recurrent_kernel(%arg0: i32, %arg1: i32, %arg2: memref<16x8x128xf32, #tpu.memory_space<vmem>>, %arg3: memref<128x128xf32, #tpu.memory_space<vmem>>, %arg4: memref<8x16x128xf32, #tpu.memory_space<vmem>>, %arg5: memref<8x128xf32, #tpu.memory_space<vmem>>) attributes {dimension_semantics = [#tpu.dimension_semantics<parallel>, #tpu.dimension_semantics<arbitrary>], iteration_bounds = array<i64: 1, 1>, scalar_prefetch = 0 : i64, scratch_operands = 1 : i64, tpu.core_type = #tpu.core_type<tc>, window_params = [{transform_indices = @transform_0, window_bounds = array<i64: 16, 8, 128>}, {pipeline_mode = #tpu.pipeline_mode<synchronous>, transform_indices = @transform_1, window_bounds = array<i64: 128, 128>}, {transform_indices = @transform_2, window_bounds = array<i64: 8, 16, 128>}]} {
    %c0_i32 = arith.constant 0 : i32
    %0 = arith.cmpi eq, %arg1, %c0_i32 : i32
    %1 = arith.extui %0 : i1 to i32
    %c0_i32_0 = arith.constant 0 : i32
    %2 = arith.cmpi ne, %1, %c0_i32_0 : i32
    scf.if %2 {
      %cst_132 = arith.constant 0.000000e+00 : f32
      %149 = vector.broadcast %cst_132 : f32 to vector<8x128xf32>
      %c0_133 = arith.constant 0 : index
      %c0_134 = arith.constant 0 : index
      %150 = vector.load %arg5[%c0_133, %c0_134] : memref<8x128xf32, #tpu.memory_space<vmem>>, vector<8x128xf32>
      tpu.vector_store %arg5[%c0_133, %c0_134], %149 {strides = array<i32>} : memref<8x128xf32, #tpu.memory_space<vmem>>, vector<8x128xf32>,
    } else {
    }
    %c0 = arith.constant 0 : index
    %c0_1 = arith.constant 0 : index
    %3 = vector.load %arg5[%c0, %c0_1] : memref<8x128xf32, #tpu.memory_space<vmem>>, vector<8x128xf32>
    %c0_2 = arith.constant 0 : index
    %c0_3 = arith.constant 0 : index
    %4 = vector.load %arg3[%c0_2, %c0_3] : memref<128x128xf32, #tpu.memory_space<vmem>>, vector<128x128xf32>
    %cst = arith.constant dense<0.000000e+00> : vector<8x128xf32>
    %5 = tpu.matmul %3, %4, %cst {dimension_numbers = #tpu.dot_dimension_numbers<[1], [0], [0], [1], [0, 0, 1, 1], [], []>} : vector<8x128xf32>, vector<128x128xf32>, vector<8x128xf32> -> vector<8x128xf32>
    %c0_4 = arith.constant 0 : index
    %c0_5 = arith.constant 0 : index
    %c0_6 = arith.constant 0 : index
    %6 = vector.load %arg2[%c0_4, %c0_5, %c0_6] : memref<16x8x128xf32, #tpu.memory_space<vmem>>, vector<1x8x128xf32>
    %7 = vector.shape_cast %6 : vector<1x8x128xf32> to vector<8x128xf32>
    %8 = arith.addf %7, %5 : vector<8x128xf32>
    %9 = math.tanh %8 : vector<8x128xf32>
    %c0_7 = arith.constant 0 : index
    %c0_8 = arith.constant 0 : index
    %c0_9 = arith.constant 0 : index
    %10 = vector.load %arg4[%c0_7, %c0_8, %c0_9] : memref<8x16x128xf32, #tpu.memory_space<vmem>>, vector<8x1x128xf32>
    %11 = vector.shape_cast %10 : vector<8x1x128xf32> to vector<8x128xf32>
    %12 = vector.shape_cast %9 : vector<8x128xf32> to vector<8x1x128xf32>
    tpu.vector_store %arg4[%c0_7, %c0_8, %c0_9], %12 {strides = array<i32>} : memref<8x16x128xf32, #tpu.memory_space<vmem>>, vector<8x1x128xf32>,
    %c0_10 = arith.constant 0 : index
    %c0_11 = arith.constant 0 : index
    %13 = vector.load %arg3[%c0_10, %c0_11] : memref<128x128xf32, #tpu.memory_space<vmem>>, vector<128x128xf32>
    %cst_12 = arith.constant dense<0.000000e+00> : vector<8x128xf32>
    %14 = tpu.matmul %9, %13, %cst_12 {dimension_numbers = #tpu.dot_dimension_numbers<[1], [0], [0], [1], [0, 0, 1, 1], [], []>} : vector<8x128xf32>, vector<128x128xf32>, vector<8x128xf32> -> vector<8x128xf32>
    %c1 = arith.constant 1 : index
    %c0_13 = arith.constant 0 : index
    %c0_14 = arith.constant 0 : index
    %15 = vector.load %arg2[%c1, %c0_13, %c0_14] : memref<16x8x128xf32, #tpu.memory_space<vmem>>, vector<1x8x128xf32>
    %16 = vector.shape_cast %15 : vector<1x8x128xf32> to vector<8x128xf32>
    %17 = arith.addf %16, %14 : vector<8x128xf32>
    %18 = math.tanh %17 : vector<8x128xf32>
    %c0_15 = arith.constant 0 : index
    %c1_16 = arith.constant 1 : index
    %c0_17 = arith.constant 0 : index
    %19 = vector.load %arg4[%c0_15, %c1_16, %c0_17] : memref<8x16x128xf32, #tpu.memory_space<vmem>>, vector<8x1x128xf32>
    %20 = vector.shape_cast %19 : vector<8x1x128xf32> to vector<8x128xf32>
    %21 = vector.shape_cast %18 : vector<8x128xf32> to vector<8x1x128xf32>
    tpu.vector_store %arg4[%c0_15, %c1_16, %c0_17], %21 {strides = array<i32>} : memref<8x16x128xf32, #tpu.memory_space<vmem>>, vector<8x1x128xf32>,
    %c0_18 = arith.constant 0 : index
    %c0_19 = arith.constant 0 : index
    %22 = vector.load %arg3[%c0_18, %c0_19] : memref<128x128xf32, #tpu.memory_space<vmem>>, vector<128x128xf32>
    %cst_20 = arith.constant dense<0.000000e+00> : vector<8x128xf32>
    %23 = tpu.matmul %18, %22, %cst_20 {dimension_numbers = #tpu.dot_dimension_numbers<[1], [0], [0], [1], [0, 0, 1, 1], [], []>} : vector<8x128xf32>, vector<128x128xf32>, vector<8x128xf32> -> vector<8x128xf32>
    %c2 = arith.constant 2 : index
    %c0_21 = arith.constant 0 : index
    %c0_22 = arith.constant 0 : index
    %24 = vector.load %arg2[%c2, %c0_21, %c0_22] : memref<16x8x128xf32, #tpu.memory_space<vmem>>, vector<1x8x128xf32>
    %25 = vector.shape_cast %24 : vector<1x8x128xf32> to vector<8x128xf32>
    %26 = arith.addf %25, %23 : vector<8x128xf32>
    %27 = math.tanh %26 : vector<8x128xf32>
    %c0_23 = arith.constant 0 : index
    %c2_24 = arith.constant 2 : index
    %c0_25 = arith.constant 0 : index
    %28 = vector.load %arg4[%c0_23, %c2_24, %c0_25] : memref<8x16x128xf32, #tpu.memory_space<vmem>>, vector<8x1x128xf32>
    %29 = vector.shape_cast %28 : vector<8x1x128xf32> to vector<8x128xf32>
    %30 = vector.shape_cast %27 : vector<8x128xf32> to vector<8x1x128xf32>
    tpu.vector_store %arg4[%c0_23, %c2_24, %c0_25], %30 {strides = array<i32>} : memref<8x16x128xf32, #tpu.memory_space<vmem>>, vector<8x1x128xf32>,
    %c0_26 = arith.constant 0 : index
    %c0_27 = arith.constant 0 : index
    %31 = vector.load %arg3[%c0_26, %c0_27] : memref<128x128xf32, #tpu.memory_space<vmem>>, vector<128x128xf32>
    %cst_28 = arith.constant dense<0.000000e+00> : vector<8x128xf32>
    %32 = tpu.matmul %27, %31, %cst_28 {dimension_numbers = #tpu.dot_dimension_numbers<[1], [0], [0], [1], [0, 0, 1, 1], [], []>} : vector<8x128xf32>, vector<128x128xf32>, vector<8x128xf32> -> vector<8x128xf32>
    %c3 = arith.constant 3 : index
    %c0_29 = arith.constant 0 : index
    %c0_30 = arith.constant 0 : index
    %33 = vector.load %arg2[%c3, %c0_29, %c0_30] : memref<16x8x128xf32, #tpu.memory_space<vmem>>, vector<1x8x128xf32>
    %34 = vector.shape_cast %33 : vector<1x8x128xf32> to vector<8x128xf32>
    %35 = arith.addf %34, %32 : vector<8x128xf32>
    %36 = math.tanh %35 : vector<8x128xf32>
    %c0_31 = arith.constant 0 : index
    %c3_32 = arith.constant 3 : index
    %c0_33 = arith.constant 0 : index
    %37 = vector.load %arg4[%c0_31, %c3_32, %c0_33] : memref<8x16x128xf32, #tpu.memory_space<vmem>>, vector<8x1x128xf32>
    %38 = vector.shape_cast %37 : vector<8x1x128xf32> to vector<8x128xf32>
    %39 = vector.shape_cast %36 : vector<8x128xf32> to vector<8x1x128xf32>
    tpu.vector_store %arg4[%c0_31, %c3_32, %c0_33], %39 {strides = array<i32>} : memref<8x16x128xf32, #tpu.memory_space<vmem>>, vector<8x1x128xf32>,
    %c0_34 = arith.constant 0 : index
    %c0_35 = arith.constant 0 : index
    %40 = vector.load %arg3[%c0_34, %c0_35] : memref<128x128xf32, #tpu.memory_space<vmem>>, vector<128x128xf32>
    %cst_36 = arith.constant dense<0.000000e+00> : vector<8x128xf32>
    %41 = tpu.matmul %36, %40, %cst_36 {dimension_numbers = #tpu.dot_dimension_numbers<[1], [0], [0], [1], [0, 0, 1, 1], [], []>} : vector<8x128xf32>, vector<128x128xf32>, vector<8x128xf32> -> vector<8x128xf32>
    %c4 = arith.constant 4 : index
    %c0_37 = arith.constant 0 : index
    %c0_38 = arith.constant 0 : index
    %42 = vector.load %arg2[%c4, %c0_37, %c0_38] : memref<16x8x128xf32, #tpu.memory_space<vmem>>, vector<1x8x128xf32>
    %43 = vector.shape_cast %42 : vector<1x8x128xf32> to vector<8x128xf32>
    %44 = arith.addf %43, %41 : vector<8x128xf32>
    %45 = math.tanh %44 : vector<8x128xf32>
    %c0_39 = arith.constant 0 : index
    %c4_40 = arith.constant 4 : index
    %c0_41 = arith.constant 0 : index
    %46 = vector.load %arg4[%c0_39, %c4_40, %c0_41] : memref<8x16x128xf32, #tpu.memory_space<vmem>>, vector<8x1x128xf32>
    %47 = vector.shape_cast %46 : vector<8x1x128xf32> to vector<8x128xf32>
    %48 = vector.shape_cast %45 : vector<8x128xf32> to vector<8x1x128xf32>
    tpu.vector_store %arg4[%c0_39, %c4_40, %c0_41], %48 {strides = array<i32>} : memref<8x16x128xf32, #tpu.memory_space<vmem>>, vector<8x1x128xf32>,
    %c0_42 = arith.constant 0 : index
    %c0_43 = arith.constant 0 : index
    %49 = vector.load %arg3[%c0_42, %c0_43] : memref<128x128xf32, #tpu.memory_space<vmem>>, vector<128x128xf32>
    %cst_44 = arith.constant dense<0.000000e+00> : vector<8x128xf32>
    %50 = tpu.matmul %45, %49, %cst_44 {dimension_numbers = #tpu.dot_dimension_numbers<[1], [0], [0], [1], [0, 0, 1, 1], [], []>} : vector<8x128xf32>, vector<128x128xf32>, vector<8x128xf32> -> vector<8x128xf32>
    %c5 = arith.constant 5 : index
    %c0_45 = arith.constant 0 : index
    %c0_46 = arith.constant 0 : index
    %51 = vector.load %arg2[%c5, %c0_45, %c0_46] : memref<16x8x128xf32, #tpu.memory_space<vmem>>, vector<1x8x128xf32>
    %52 = vector.shape_cast %51 : vector<1x8x128xf32> to vector<8x128xf32>
    %53 = arith.addf %52, %50 : vector<8x128xf32>
    %54 = math.tanh %53 : vector<8x128xf32>
    %c0_47 = arith.constant 0 : index
    %c5_48 = arith.constant 5 : index
    %c0_49 = arith.constant 0 : index
    %55 = vector.load %arg4[%c0_47, %c5_48, %c0_49] : memref<8x16x128xf32, #tpu.memory_space<vmem>>, vector<8x1x128xf32>
    %56 = vector.shape_cast %55 : vector<8x1x128xf32> to vector<8x128xf32>
    %57 = vector.shape_cast %54 : vector<8x128xf32> to vector<8x1x128xf32>
    tpu.vector_store %arg4[%c0_47, %c5_48, %c0_49], %57 {strides = array<i32>} : memref<8x16x128xf32, #tpu.memory_space<vmem>>, vector<8x1x128xf32>,
    %c0_50 = arith.constant 0 : index
    %c0_51 = arith.constant 0 : index
    %58 = vector.load %arg3[%c0_50, %c0_51] : memref<128x128xf32, #tpu.memory_space<vmem>>, vector<128x128xf32>
    %cst_52 = arith.constant dense<0.000000e+00> : vector<8x128xf32>
    %59 = tpu.matmul %54, %58, %cst_52 {dimension_numbers = #tpu.dot_dimension_numbers<[1], [0], [0], [1], [0, 0, 1, 1], [], []>} : vector<8x128xf32>, vector<128x128xf32>, vector<8x128xf32> -> vector<8x128xf32>
    %c6 = arith.constant 6 : index
    %c0_53 = arith.constant 0 : index
    %c0_54 = arith.constant 0 : index
    %60 = vector.load %arg2[%c6, %c0_53, %c0_54] : memref<16x8x128xf32, #tpu.memory_space<vmem>>, vector<1x8x128xf32>
    %61 = vector.shape_cast %60 : vector<1x8x128xf32> to vector<8x128xf32>
    %62 = arith.addf %61, %59 : vector<8x128xf32>
    %63 = math.tanh %62 : vector<8x128xf32>
    %c0_55 = arith.constant 0 : index
    %c6_56 = arith.constant 6 : index
    %c0_57 = arith.constant 0 : index
    %64 = vector.load %arg4[%c0_55, %c6_56, %c0_57] : memref<8x16x128xf32, #tpu.memory_space<vmem>>, vector<8x1x128xf32>
    %65 = vector.shape_cast %64 : vector<8x1x128xf32> to vector<8x128xf32>
    %66 = vector.shape_cast %63 : vector<8x128xf32> to vector<8x1x128xf32>
    tpu.vector_store %arg4[%c0_55, %c6_56, %c0_57], %66 {strides = array<i32>} : memref<8x16x128xf32, #tpu.memory_space<vmem>>, vector<8x1x128xf32>,
    %c0_58 = arith.constant 0 : index
    %c0_59 = arith.constant 0 : index
    %67 = vector.load %arg3[%c0_58, %c0_59] : memref<128x128xf32, #tpu.memory_space<vmem>>, vector<128x128xf32>
    %cst_60 = arith.constant dense<0.000000e+00> : vector<8x128xf32>
    %68 = tpu.matmul %63, %67, %cst_60 {dimension_numbers = #tpu.dot_dimension_numbers<[1], [0], [0], [1], [0, 0, 1, 1], [], []>} : vector<8x128xf32>, vector<128x128xf32>, vector<8x128xf32> -> vector<8x128xf32>
    %c7 = arith.constant 7 : index
    %c0_61 = arith.constant 0 : index
    %c0_62 = arith.constant 0 : index
    %69 = vector.load %arg2[%c7, %c0_61, %c0_62] : memref<16x8x128xf32, #tpu.memory_space<vmem>>, vector<1x8x128xf32>
    %70 = vector.shape_cast %69 : vector<1x8x128xf32> to vector<8x128xf32>
    %71 = arith.addf %70, %68 : vector<8x128xf32>
    %72 = math.tanh %71 : vector<8x128xf32>
    %c0_63 = arith.constant 0 : index
    %c7_64 = arith.constant 7 : index
    %c0_65 = arith.constant 0 : index
    %73 = vector.load %arg4[%c0_63, %c7_64, %c0_65] : memref<8x16x128xf32, #tpu.memory_space<vmem>>, vector<8x1x128xf32>
    %74 = vector.shape_cast %73 : vector<8x1x128xf32> to vector<8x128xf32>
    %75 = vector.shape_cast %72 : vector<8x128xf32> to vector<8x1x128xf32>
    tpu.vector_store %arg4[%c0_63, %c7_64, %c0_65], %75 {strides = array<i32>} : memref<8x16x128xf32, #tpu.memory_space<vmem>>, vector<8x1x128xf32>,
    %c0_66 = arith.constant 0 : index
    %c0_67 = arith.constant 0 : index
    %76 = vector.load %arg3[%c0_66, %c0_67] : memref<128x128xf32, #tpu.memory_space<vmem>>, vector<128x128xf32>
    %cst_68 = arith.constant dense<0.000000e+00> : vector<8x128xf32>
    %77 = tpu.matmul %72, %76, %cst_68 {dimension_numbers = #tpu.dot_dimension_numbers<[1], [0], [0], [1], [0, 0, 1, 1], [], []>} : vector<8x128xf32>, vector<128x128xf32>, vector<8x128xf32> -> vector<8x128xf32>
    %c8 = arith.constant 8 : index
    %c0_69 = arith.constant 0 : index
    %c0_70 = arith.constant 0 : index
    %78 = vector.load %arg2[%c8, %c0_69, %c0_70] : memref<16x8x128xf32, #tpu.memory_space<vmem>>, vector<1x8x128xf32>
    %79 = vector.shape_cast %78 : vector<1x8x128xf32> to vector<8x128xf32>
    %80 = arith.addf %79, %77 : vector<8x128xf32>
    %81 = math.tanh %80 : vector<8x128xf32>
    %c0_71 = arith.constant 0 : index
    %c8_72 = arith.constant 8 : index
    %c0_73 = arith.constant 0 : index
    %82 = vector.load %arg4[%c0_71, %c8_72, %c0_73] : memref<8x16x128xf32, #tpu.memory_space<vmem>>, vector<8x1x128xf32>
    %83 = vector.shape_cast %82 : vector<8x1x128xf32> to vector<8x128xf32>
    %84 = vector.shape_cast %81 : vector<8x128xf32> to vector<8x1x128xf32>
    tpu.vector_store %arg4[%c0_71, %c8_72, %c0_73], %84 {strides = array<i32>} : memref<8x16x128xf32, #tpu.memory_space<vmem>>, vector<8x1x128xf32>,
    %c0_74 = arith.constant 0 : index
    %c0_75 = arith.constant 0 : index
    %85 = vector.load %arg3[%c0_74, %c0_75] : memref<128x128xf32, #tpu.memory_space<vmem>>, vector<128x128xf32>
    %cst_76 = arith.constant dense<0.000000e+00> : vector<8x128xf32>
    %86 = tpu.matmul %81, %85, %cst_76 {dimension_numbers = #tpu.dot_dimension_numbers<[1], [0], [0], [1], [0, 0, 1, 1], [], []>} : vector<8x128xf32>, vector<128x128xf32>, vector<8x128xf32> -> vector<8x128xf32>
    %c9 = arith.constant 9 : index
    %c0_77 = arith.constant 0 : index
    %c0_78 = arith.constant 0 : index
    %87 = vector.load %arg2[%c9, %c0_77, %c0_78] : memref<16x8x128xf32, #tpu.memory_space<vmem>>, vector<1x8x128xf32>
    %88 = vector.shape_cast %87 : vector<1x8x128xf32> to vector<8x128xf32>
    %89 = arith.addf %88, %86 : vector<8x128xf32>
    %90 = math.tanh %89 : vector<8x128xf32>
    %c0_79 = arith.constant 0 : index
    %c9_80 = arith.constant 9 : index
    %c0_81 = arith.constant 0 : index
    %91 = vector.load %arg4[%c0_79, %c9_80, %c0_81] : memref<8x16x128xf32, #tpu.memory_space<vmem>>, vector<8x1x128xf32>
    %92 = vector.shape_cast %91 : vector<8x1x128xf32> to vector<8x128xf32>
    %93 = vector.shape_cast %90 : vector<8x128xf32> to vector<8x1x128xf32>
    tpu.vector_store %arg4[%c0_79, %c9_80, %c0_81], %93 {strides = array<i32>} : memref<8x16x128xf32, #tpu.memory_space<vmem>>, vector<8x1x128xf32>,
    %c0_82 = arith.constant 0 : index
    %c0_83 = arith.constant 0 : index
    %94 = vector.load %arg3[%c0_82, %c0_83] : memref<128x128xf32, #tpu.memory_space<vmem>>, vector<128x128xf32>
    %cst_84 = arith.constant dense<0.000000e+00> : vector<8x128xf32>
    %95 = tpu.matmul %90, %94, %cst_84 {dimension_numbers = #tpu.dot_dimension_numbers<[1], [0], [0], [1], [0, 0, 1, 1], [], []>} : vector<8x128xf32>, vector<128x128xf32>, vector<8x128xf32> -> vector<8x128xf32>
    %c10 = arith.constant 10 : index
    %c0_85 = arith.constant 0 : index
    %c0_86 = arith.constant 0 : index
    %96 = vector.load %arg2[%c10, %c0_85, %c0_86] : memref<16x8x128xf32, #tpu.memory_space<vmem>>, vector<1x8x128xf32>
    %97 = vector.shape_cast %96 : vector<1x8x128xf32> to vector<8x128xf32>
    %98 = arith.addf %97, %95 : vector<8x128xf32>
    %99 = math.tanh %98 : vector<8x128xf32>
    %c0_87 = arith.constant 0 : index
    %c10_88 = arith.constant 10 : index
    %c0_89 = arith.constant 0 : index
    %100 = vector.load %arg4[%c0_87, %c10_88, %c0_89] : memref<8x16x128xf32, #tpu.memory_space<vmem>>, vector<8x1x128xf32>
    %101 = vector.shape_cast %100 : vector<8x1x128xf32> to vector<8x128xf32>
    %102 = vector.shape_cast %99 : vector<8x128xf32> to vector<8x1x128xf32>
    tpu.vector_store %arg4[%c0_87, %c10_88, %c0_89], %102 {strides = array<i32>} : memref<8x16x128xf32, #tpu.memory_space<vmem>>, vector<8x1x128xf32>,
    %c0_90 = arith.constant 0 : index
    %c0_91 = arith.constant 0 : index
    %103 = vector.load %arg3[%c0_90, %c0_91] : memref<128x128xf32, #tpu.memory_space<vmem>>, vector<128x128xf32>
    %cst_92 = arith.constant dense<0.000000e+00> : vector<8x128xf32>
    %104 = tpu.matmul %99, %103, %cst_92 {dimension_numbers = #tpu.dot_dimension_numbers<[1], [0], [0], [1], [0, 0, 1, 1], [], []>} : vector<8x128xf32>, vector<128x128xf32>, vector<8x128xf32> -> vector<8x128xf32>
    %c11 = arith.constant 11 : index
    %c0_93 = arith.constant 0 : index
    %c0_94 = arith.constant 0 : index
    %105 = vector.load %arg2[%c11, %c0_93, %c0_94] : memref<16x8x128xf32, #tpu.memory_space<vmem>>, vector<1x8x128xf32>
    %106 = vector.shape_cast %105 : vector<1x8x128xf32> to vector<8x128xf32>
    %107 = arith.addf %106, %104 : vector<8x128xf32>
    %108 = math.tanh %107 : vector<8x128xf32>
    %c0_95 = arith.constant 0 : index
    %c11_96 = arith.constant 11 : index
    %c0_97 = arith.constant 0 : index
    %109 = vector.load %arg4[%c0_95, %c11_96, %c0_97] : memref<8x16x128xf32, #tpu.memory_space<vmem>>, vector<8x1x128xf32>
    %110 = vector.shape_cast %109 : vector<8x1x128xf32> to vector<8x128xf32>
    %111 = vector.shape_cast %108 : vector<8x128xf32> to vector<8x1x128xf32>
    tpu.vector_store %arg4[%c0_95, %c11_96, %c0_97], %111 {strides = array<i32>} : memref<8x16x128xf32, #tpu.memory_space<vmem>>, vector<8x1x128xf32>,
    %c0_98 = arith.constant 0 : index
    %c0_99 = arith.constant 0 : index
    %112 = vector.load %arg3[%c0_98, %c0_99] : memref<128x128xf32, #tpu.memory_space<vmem>>, vector<128x128xf32>
    %cst_100 = arith.constant dense<0.000000e+00> : vector<8x128xf32>
    %113 = tpu.matmul %108, %112, %cst_100 {dimension_numbers = #tpu.dot_dimension_numbers<[1], [0], [0], [1], [0, 0, 1, 1], [], []>} : vector<8x128xf32>, vector<128x128xf32>, vector<8x128xf32> -> vector<8x128xf32>
    %c12 = arith.constant 12 : index
    %c0_101 = arith.constant 0 : index
    %c0_102 = arith.constant 0 : index
    %114 = vector.load %arg2[%c12, %c0_101, %c0_102] : memref<16x8x128xf32, #tpu.memory_space<vmem>>, vector<1x8x128xf32>
    %115 = vector.shape_cast %114 : vector<1x8x128xf32> to vector<8x128xf32>
    %116 = arith.addf %115, %113 : vector<8x128xf32>
    %117 = math.tanh %116 : vector<8x128xf32>
    %c0_103 = arith.constant 0 : index
    %c12_104 = arith.constant 12 : index
    %c0_105 = arith.constant 0 : index
    %118 = vector.load %arg4[%c0_103, %c12_104, %c0_105] : memref<8x16x128xf32, #tpu.memory_space<vmem>>, vector<8x1x128xf32>
    %119 = vector.shape_cast %118 : vector<8x1x128xf32> to vector<8x128xf32>
    %120 = vector.shape_cast %117 : vector<8x128xf32> to vector<8x1x128xf32>
    tpu.vector_store %arg4[%c0_103, %c12_104, %c0_105], %120 {strides = array<i32>} : memref<8x16x128xf32, #tpu.memory_space<vmem>>, vector<8x1x128xf32>,
    %c0_106 = arith.constant 0 : index
    %c0_107 = arith.constant 0 : index
    %121 = vector.load %arg3[%c0_106, %c0_107] : memref<128x128xf32, #tpu.memory_space<vmem>>, vector<128x128xf32>
    %cst_108 = arith.constant dense<0.000000e+00> : vector<8x128xf32>
    %122 = tpu.matmul %117, %121, %cst_108 {dimension_numbers = #tpu.dot_dimension_numbers<[1], [0], [0], [1], [0, 0, 1, 1], [], []>} : vector<8x128xf32>, vector<128x128xf32>, vector<8x128xf32> -> vector<8x128xf32>
    %c13 = arith.constant 13 : index
    %c0_109 = arith.constant 0 : index
    %c0_110 = arith.constant 0 : index
    %123 = vector.load %arg2[%c13, %c0_109, %c0_110] : memref<16x8x128xf32, #tpu.memory_space<vmem>>, vector<1x8x128xf32>
    %124 = vector.shape_cast %123 : vector<1x8x128xf32> to vector<8x128xf32>
    %125 = arith.addf %124, %122 : vector<8x128xf32>
    %126 = math.tanh %125 : vector<8x128xf32>
    %c0_111 = arith.constant 0 : index
    %c13_112 = arith.constant 13 : index
    %c0_113 = arith.constant 0 : index
    %127 = vector.load %arg4[%c0_111, %c13_112, %c0_113] : memref<8x16x128xf32, #tpu.memory_space<vmem>>, vector<8x1x128xf32>
    %128 = vector.shape_cast %127 : vector<8x1x128xf32> to vector<8x128xf32>
    %129 = vector.shape_cast %126 : vector<8x128xf32> to vector<8x1x128xf32>
    tpu.vector_store %arg4[%c0_111, %c13_112, %c0_113], %129 {strides = array<i32>} : memref<8x16x128xf32, #tpu.memory_space<vmem>>, vector<8x1x128xf32>,
    %c0_114 = arith.constant 0 : index
    %c0_115 = arith.constant 0 : index
    %130 = vector.load %arg3[%c0_114, %c0_115] : memref<128x128xf32, #tpu.memory_space<vmem>>, vector<128x128xf32>
    %cst_116 = arith.constant dense<0.000000e+00> : vector<8x128xf32>
    %131 = tpu.matmul %126, %130, %cst_116 {dimension_numbers = #tpu.dot_dimension_numbers<[1], [0], [0], [1], [0, 0, 1, 1], [], []>} : vector<8x128xf32>, vector<128x128xf32>, vector<8x128xf32> -> vector<8x128xf32>
    %c14 = arith.constant 14 : index
    %c0_117 = arith.constant 0 : index
    %c0_118 = arith.constant 0 : index
    %132 = vector.load %arg2[%c14, %c0_117, %c0_118] : memref<16x8x128xf32, #tpu.memory_space<vmem>>, vector<1x8x128xf32>
    %133 = vector.shape_cast %132 : vector<1x8x128xf32> to vector<8x128xf32>
    %134 = arith.addf %133, %131 : vector<8x128xf32>
    %135 = math.tanh %134 : vector<8x128xf32>
    %c0_119 = arith.constant 0 : index
    %c14_120 = arith.constant 14 : index
    %c0_121 = arith.constant 0 : index
    %136 = vector.load %arg4[%c0_119, %c14_120, %c0_121] : memref<8x16x128xf32, #tpu.memory_space<vmem>>, vector<8x1x128xf32>
    %137 = vector.shape_cast %136 : vector<8x1x128xf32> to vector<8x128xf32>
    %138 = vector.shape_cast %135 : vector<8x128xf32> to vector<8x1x128xf32>
    tpu.vector_store %arg4[%c0_119, %c14_120, %c0_121], %138 {strides = array<i32>} : memref<8x16x128xf32, #tpu.memory_space<vmem>>, vector<8x1x128xf32>,
    %c0_122 = arith.constant 0 : index
    %c0_123 = arith.constant 0 : index
    %139 = vector.load %arg3[%c0_122, %c0_123] : memref<128x128xf32, #tpu.memory_space<vmem>>, vector<128x128xf32>
    %cst_124 = arith.constant dense<0.000000e+00> : vector<8x128xf32>
    %140 = tpu.matmul %135, %139, %cst_124 {dimension_numbers = #tpu.dot_dimension_numbers<[1], [0], [0], [1], [0, 0, 1, 1], [], []>} : vector<8x128xf32>, vector<128x128xf32>, vector<8x128xf32> -> vector<8x128xf32>
    %c15 = arith.constant 15 : index
    %c0_125 = arith.constant 0 : index
    %c0_126 = arith.constant 0 : index
    %141 = vector.load %arg2[%c15, %c0_125, %c0_126] : memref<16x8x128xf32, #tpu.memory_space<vmem>>, vector<1x8x128xf32>
    %142 = vector.shape_cast %141 : vector<1x8x128xf32> to vector<8x128xf32>
    %143 = arith.addf %142, %140 : vector<8x128xf32>
    %144 = math.tanh %143 : vector<8x128xf32>
    %c0_127 = arith.constant 0 : index
    %c15_128 = arith.constant 15 : index
    %c0_129 = arith.constant 0 : index
    %145 = vector.load %arg4[%c0_127, %c15_128, %c0_129] : memref<8x16x128xf32, #tpu.memory_space<vmem>>, vector<8x1x128xf32>
    %146 = vector.shape_cast %145 : vector<8x1x128xf32> to vector<8x128xf32>
    %147 = vector.shape_cast %144 : vector<8x128xf32> to vector<8x1x128xf32>
    tpu.vector_store %arg4[%c0_127, %c15_128, %c0_129], %147 {strides = array<i32>} : memref<8x16x128xf32, #tpu.memory_space<vmem>>, vector<8x1x128xf32>,
    %c0_130 = arith.constant 0 : index
    %c0_131 = arith.constant 0 : index
    %148 = vector.load %arg5[%c0_130, %c0_131] : memref<8x128xf32, #tpu.memory_space<vmem>>, vector<8x128xf32>
    tpu.vector_store %arg5[%c0_130, %c0_131], %144 {strides = array<i32>} : memref<8x128xf32, #tpu.memory_space<vmem>>, vector<8x128xf32>,
    return
  }
  func.func @transform_0(%arg0: i32, %arg1: i32) -> (i32, i32, i32) {
    %c0_i32 = arith.constant 0 : i32
    %c0_i32_0 = arith.constant 0 : i32
    return %arg1, %arg0, %c0_i32 : i32, i32, i32
  }
  func.func @transform_1(%arg0: i32, %arg1: i32) -> (i32, i32) {
    %c0_i32 = arith.constant 0 : i32
    %c0_i32_0 = arith.constant 0 : i32
    %c0_i32_1 = arith.constant 0 : i32
    return %c0_i32, %c0_i32_0 : i32, i32
  }
  func.func @transform_2(%arg0: i32, %arg1: i32) -> (i32, i32, i32) {
    %c0_i32 = arith.constant 0 : i32
    %c0_i32_0 = arith.constant 0 : i32
    return %arg0, %arg1, %c0_i32 : i32, i32, i32
  }
}

</mosaic_0001>

<bundles_post_ra>
// kernel: reservoir_layer_pallas.1
= control target key start
LH: loop header
LB: loop body
LE: loop exit
PB: predicated region body
PF: predicated region fallthrough
CT: control target
= control target key end

     0   :  { %v3463_v0 = vmov 0.0   ;;  %vm3464_vm0 = vmmov 0   ;;  %v3465_v21 = vmov 1966171168   ;;  %v111_v23 = vlaneseq  ;;  %s4732_s1 = inlined_call_operand.vmem [shape: f32[128,128], index: 1, kind: input, shape index: {}]   ;;  %s4733_s0 = inlined_call_operand.vmem [shape: f32[16,8,128], index: 0, kind: input, shape index: {}]   ;;  %s4734_s2 = inlined_call_operand.vmem [shape: f32[8,16,128], index: 2, kind: output, shape index: {}]  }
   0x1   :  { %2868 = vmatprep.subr.mxu0 %v3463_v0  ;;  %v3485_v1 = vld [vmem:[%s4732_s1 + $0x78] sm:$0xff]  ;;  %v3490_v2 = vld [vmem:[%s4732_s1 + $0x70] sm:$0xff]  ;;  %2900 = vmatprep.mubr.msk.f32.mxu0 %vm3464_vm0, %v3463_v0  ;;  %v3500_v3 = vld [vmem:[%s4732_s1 + $0x68] sm:$0xff]  ;;  %v109_v22 = vunpack.c.l.s4 %v3465_v21 }
   0x2   :  { %2869 = vmatpush3.msra.mxu0 %v3485_v1  ;;  %2903 = vmatprep.subr.mxu1 %v3463_v0  ;;  %v3509_v4 = vld [vmem:[%s4732_s1 + $0x60] sm:$0xff]  ;;  %v3518_v5 = vld [vmem:[%s4732_s1 + $0x58] sm:$0xff]  ;;  %v3527_v6 = vld [vmem:[%s4732_s1 + $0x50] sm:$0xff]  ;;  %v112_v25 = vshrl.u32 %v111_v23, 7 }
   0x3   :  { %2870 = vmatprep.subr.mxu0 %v3463_v0  ;;  %2904 = vmatpush3.msra.mxu1 %v3485_v1  ;;  %v3536_v7 = vld [vmem:[%s4732_s1 + $0x48] sm:$0xff]  ;;  %v3545_v8 = vld [vmem:[%s4732_s1 + $0x40] sm:$0xff]  ;;  %v3554_v9 = vld [vmem:[%s4732_s1 + $0x38] sm:$0xff]  ;;  %v110_v24 = vunpack.c.0.s8 %v109_v22 }
   0x4   :  { %2871 = vmatpush3.msra.mxu0 %v3490_v2  ;;  %2905 = vmatprep.subr.mxu1 %v3463_v0  ;;  %v3563_v10 = vld [vmem:[%s4732_s1 + $0x30] sm:$0xff]  ;;  %v3572_v11 = vld [vmem:[%s4732_s1 + $0x28] sm:$0xff]  ;;  %v3581_v12 = vld [vmem:[%s4732_s1 + $0x20] sm:$0xff] }
   0x5   :  { %2872 = vmatprep.subr.mxu0 %v3463_v0  ;;  %2906 = vmatpush3.msra.mxu1 %v3490_v2  ;;  %v3590_v13 = vld [vmem:[%s4732_s1 + $0x18] sm:$0xff]  ;;  %v3599_v14 = vld [vmem:[%s4732_s1 + $0x10] sm:$0xff]  ;;  %v3608_v15 = vld [vmem:[%s4732_s1 + $0x8] sm:$0xff]  ;;  %v3669_v26 = vsub.s32 %v110_v24, %v112_v25 }
   0x6   :  { %2873 = vmatpush3.msra.mxu0 %v3500_v3  ;;  %2907 = vmatprep.subr.mxu1 %v3463_v0  ;;  %v3617_v16 = vld [vmem:[%s4732_s1] sm:$0xff]  ;;  %v2521_v41 = vld [vmem:[%s4733_s0 + $0x8] sm:$0xff]  ;;  %v2526_v59 = vld [vmem:[%s4733_s0 + $0x10] sm:$0xff] }
   0x7   :  { %2874 = vmatprep.subr.mxu0 %v3463_v0  ;;  %2908 = vmatpush3.msra.mxu1 %v3500_v3  ;;  %v103_v17 = vld [vmem:[%s4733_s0] sm:$0xff] }
   0x8   :  { %2875 = vmatpush3.msra.mxu0 %v3509_v4  ;;  %2909 = vmatprep.subr.mxu1 %v3463_v0 }
   0x9   :  { %2876 = vmatprep.subr.mxu0 %v3463_v0  ;;  %2910 = vmatpush3.msra.mxu1 %v3509_v4 }
   0xa   :  { %2877 = vmatpush3.msra.mxu0 %v3518_v5  ;;  %2911 = vmatprep.subr.mxu1 %v3463_v0 }
   0xb   :  { %2878 = vmatprep.subr.mxu0 %v3463_v0  ;;  %2912 = vmatpush3.msra.mxu1 %v3518_v5 }
   0xc   :  { %2879 = vmatpush3.msra.mxu0 %v3527_v6  ;;  %2913 = vmatprep.subr.mxu1 %v3463_v0 }
   0xd   :  { %2880 = vmatprep.subr.mxu0 %v3463_v0  ;;  %2914 = vmatpush3.msra.mxu1 %v3527_v6 }
   0xe   :  { %2881 = vmatpush3.msra.mxu0 %v3536_v7  ;;  %2915 = vmatprep.subr.mxu1 %v3463_v0 }
   0xf   :  { %2882 = vmatprep.subr.mxu0 %v3463_v0  ;;  %2916 = vmatpush3.msra.mxu1 %v3536_v7 }
  0x10   :  { %2883 = vmatpush3.msra.mxu0 %v3545_v8  ;;  %2917 = vmatprep.subr.mxu1 %v3463_v0 }
  0x11   :  { %2884 = vmatprep.subr.mxu0 %v3463_v0  ;;  %2918 = vmatpush3.msra.mxu1 %v3545_v8 }
  0x12   :  { %2885 = vmatpush3.msra.mxu0 %v3554_v9  ;;  %2919 = vmatprep.subr.mxu1 %v3463_v0 }
  0x13   :  { %2886 = vmatprep.subr.mxu0 %v3463_v0  ;;  %2920 = vmatpush3.msra.mxu1 %v3554_v9 }
  0x14   :  { %2887 = vmatpush3.msra.mxu0 %v3563_v10  ;;  %2921 = vmatprep.subr.mxu1 %v3463_v0 }
  0x15   :  { %2888 = vmatprep.subr.mxu0 %v3463_v0  ;;  %2922 = vmatpush3.msra.mxu1 %v3563_v10 }
  0x16   :  { %2889 = vmatpush3.msra.mxu0 %v3572_v11  ;;  %2923 = vmatprep.subr.mxu1 %v3463_v0 }
  0x17   :  { %2890 = vmatprep.subr.mxu0 %v3463_v0  ;;  %2924 = vmatpush3.msra.mxu1 %v3572_v11 }
  0x18   :  { %2891 = vmatpush3.msra.mxu0 %v3581_v12  ;;  %2925 = vmatprep.subr.mxu1 %v3463_v0 }
  0x19   :  { %2892 = vmatprep.subr.mxu0 %v3463_v0  ;;  %2926 = vmatpush3.msra.mxu1 %v3581_v12 }
  0x1a   :  { %2893 = vmatpush3.msra.mxu0 %v3590_v13  ;;  %2927 = vmatprep.subr.mxu1 %v3463_v0 }
  0x1b   :  { %2894 = vmatprep.subr.mxu0 %v3463_v0  ;;  %2928 = vmatpush3.msra.mxu1 %v3590_v13 }
  0x1c   :  { %2895 = vmatpush3.msra.mxu0 %v3599_v14  ;;  %2929 = vmatprep.subr.mxu1 %v3463_v0 }
  0x1d   :  { %2896 = vmatprep.subr.mxu0 %v3463_v0  ;;  %2930 = vmatpush3.msra.mxu1 %v3599_v14 }
  0x1e   :  { %2897 = vmatpush3.msra.mxu0 %v3608_v15  ;;  %2931 = vmatprep.subr.mxu1 %v3463_v0 }
  0x1f   :  { %2898 = vmatprep.subr.mxu0 %v3463_v0  ;;  %2932 = vmatpush3.msra.mxu1 %v3608_v15 }
  0x20   :  { %2899 = vmatpush3.msra.mxu0 %v3617_v16  ;;  %2933 = vmatprep.subr.mxu1 %v3463_v0 }
  0x21   :  { %2901 = vmatmul.mubr.f32.vlgmr.msra.gmra.mxu0 %v3463_v0  ;;  %2934 = vmatpush3.msra.mxu1 %v3617_v16 }
  0x22   :  { %2935 = vmatprep.mubr.msk.f32.mxu1 %vm3464_vm0, %v3463_v0  ;;  %2938 = vmatprep.subr.mxu0 %v3463_v0 }
  0x23   :  { %2939 = vmatpush3.msra.mxu0 %v3485_v1  ;;  %2970 = vmatprep.mubr.msk.f32.mxu0 %vm3464_vm0, %v3463_v0 }
  0x24   :  { %2940 = vmatprep.subr.mxu0 %v3463_v0  ;;  %2973 = vmatprep.subr.mxu1 %v3463_v0 }
  0x25   :  { %2941 = vmatpush3.msra.mxu0 %v3490_v2 }
  0x26   :  { %2942 = vmatprep.subr.mxu0 %v3463_v0 }
  0x27   :  { %2943 = vmatpush3.msra.mxu0 %v3500_v3 }
  0x28   :  { %2944 = vmatprep.subr.mxu0 %v3463_v0 }
  0x29   :  { %2945 = vmatpush3.msra.mxu0 %v3509_v4 }
  0x2a   :  { %2946 = vmatprep.subr.mxu0 %v3463_v0 }
  0x2b   :  { %2947 = vmatpush3.msra.mxu0 %v3518_v5 }
  0x2c   :  { %2948 = vmatprep.subr.mxu0 %v3463_v0 }
  0x2d   :  { %2949 = vmatpush3.msra.mxu0 %v3527_v6 }
  0x2e   :  { %2950 = vmatprep.subr.mxu0 %v3463_v0 }
  0x2f   :  { %2951 = vmatpush3.msra.mxu0 %v3536_v7 }
  0x30   :  { %2952 = vmatprep.subr.mxu0 %v3463_v0 }
  0x31   :  { %2953 = vmatpush3.msra.mxu0 %v3545_v8 }
  0x32   :  { %2954 = vmatprep.subr.mxu0 %v3463_v0 }
  0x33   :  { %2955 = vmatpush3.msra.mxu0 %v3554_v9 }
  0x34   :  { %2956 = vmatprep.subr.mxu0 %v3463_v0 }
  0x35   :  { %2957 = vmatpush3.msra.mxu0 %v3563_v10 }
  0x36   :  { %2958 = vmatprep.subr.mxu0 %v3463_v0 }
  0x37   :  { %2959 = vmatpush3.msra.mxu0 %v3572_v11 }
  0x38   :  { %2960 = vmatprep.subr.mxu0 %v3463_v0 }
  0x39   :  { %2961 = vmatpush3.msra.mxu0 %v3581_v12 }
  0x3a   :  { %2962 = vmatprep.subr.mxu0 %v3463_v0 }
  0x3b   :  { %2963 = vmatpush3.msra.mxu0 %v3590_v13 }
  0x3c   :  { %2964 = vmatprep.subr.mxu0 %v3463_v0 }
  0x3d   :  { %2965 = vmatpush3.msra.mxu0 %v3599_v14 }
  0x3e   :  { %2966 = vmatprep.subr.mxu0 %v3463_v0 }
  0x3f   :  { %2967 = vmatpush3.msra.mxu0 %v3608_v15 }
  0x40   :  { %2968 = vmatprep.subr.mxu0 %v3463_v0 }
  0x41   :  { %2969 = vmatpush3.msra.mxu0 %v3617_v16 }
  0x42   :  { %3008 = vmatprep.subr.mxu0 %v3463_v0 }
  0xe1   :  { %v99_v18 = vpop.f32.mrf.mxu0 }
  0xe2   :  { %v104_v19 = vadd.f32 %v103_v17, %v99_v18 }
  0xe3   :  { %v2902_v20 = vpop.f32.mrf.mxu0 }
  0xe4   :  { %3431 = vtanh.f32 %v104_v19 }
  0xf1   :  { %v3432_v27 = vpop.eup %3431 }
  0xf2   :  { %v107_v28 = vcombine.high %v3432_v27, %v3432_v27  ;;  %v114_v29 = vrot.slane %v3432_v27, %v3669_v26  ;;  %2936 = vmatmul.mubr.f32.vlgmr.msra.gmra.mxu1 %v3432_v27 }
  0xf3   :  { %2974 = vmatpush3.msra.mxu1 %v3485_v1  ;;  %3005 = vmatprep.mubr.msk.f32.mxu1 %vm3464_vm0, %v3463_v0 }
  0xf4   :  { %v121_v30 = vrot.slane %v107_v28, %v3669_v26  ;;  %v122_v31 = vcombine.high %v114_v29, %v114_v29  ;;  %v130_v32 = vrot.slane %v114_v29, %v3669_v26  ;;  %2517 = vst.sshfl [vmem:[%s4734_s2] sm:$0x1 pattern:$0x73625140] %v114_v29  ;;  %2975 = vmatprep.subr.mxu1 %v3463_v0 }
  0xf5   :  { %2976 = vmatpush3.msra.mxu1 %v3490_v2 }
  0xf6   :  { %v123_v33 = vcombine.high %v121_v30, %v121_v30  ;;  %v137_v34 = vrot.slane %v121_v30, %v3669_v26  ;;  %v144_v35 = vrot.slane %v122_v31, %v3669_v26  ;;  %v152_v36 = vcombine.high %v130_v32, %v130_v32  ;;  %2518 = vst.sshfl [vmem:[%s4734_s2 + $0x10] sm:$0x1 pattern:$0x73625140] %v122_v31  ;;  %v2531_v31 = vld [vmem:[%s4733_s0 + $0x18] sm:$0xff] }
  0xf7   :  { %2519 = vst.sshfl [vmem:[%s4734_s2 + $0x40] sm:$0x1 pattern:$0x73625140] %v121_v30  ;;  %2977 = vmatprep.subr.mxu1 %v3463_v0 }
  0xf8   :  { %2978 = vmatpush3.msra.mxu1 %v3500_v3  ;;  %v151_v37 = vrot.slane %v123_v33, %v3669_v26  ;;  %v153_v38 = vcombine.high %v137_v34, %v137_v34  ;;  %v154_v39 = vcombine.high %v144_v35, %v144_v35  ;;  %166 = vst [vmem:[%s4734_s2 + $0x20] sm:$0x1] %v152_v36  ;;  %2520 = vst.sshfl [vmem:[%s4734_s2 + $0x50] sm:$0x1 pattern:$0x73625140] %v123_v33 }
  0xf9   :  { %2979 = vmatprep.subr.mxu1 %v3463_v0 }
  0xfa   :  { %2980 = vmatpush3.msra.mxu1 %v3509_v4  ;;  %v155_v40 = vcombine.high %v151_v37, %v151_v37  ;;  %167 = vst [vmem:[%s4734_s2 + $0x30] sm:$0x1] %v154_v39  ;;  %170 = vst [vmem:[%s4734_s2 + $0x60] sm:$0x1] %v153_v38 }
  0xfb   :  { %2981 = vmatprep.subr.mxu1 %v3463_v0 }
  0xfc   :  { %2982 = vmatpush3.msra.mxu1 %v3518_v5  ;;  %171 = vst [vmem:[%s4734_s2 + $0x70] sm:$0x1] %v155_v40 }
  0xfd   :  { %2983 = vmatprep.subr.mxu1 %v3463_v0 }
  0xfe   :  { %2984 = vmatpush3.msra.mxu1 %v3527_v6 }
  0xff   :  { %2985 = vmatprep.subr.mxu1 %v3463_v0 }
 0x100   :  { %2986 = vmatpush3.msra.mxu1 %v3536_v7 }
 0x101   :  { %2987 = vmatprep.subr.mxu1 %v3463_v0 }
 0x102   :  { %2988 = vmatpush3.msra.mxu1 %v3545_v8 }
 0x103   :  { %2989 = vmatprep.subr.mxu1 %v3463_v0 }
 0x104   :  { %2990 = vmatpush3.msra.mxu1 %v3554_v9 }
 0x105   :  { %2991 = vmatprep.subr.mxu1 %v3463_v0 }
 0x106   :  { %2992 = vmatpush3.msra.mxu1 %v3563_v10 }
 0x107   :  { %2993 = vmatprep.subr.mxu1 %v3463_v0 }
 0x108   :  { %2994 = vmatpush3.msra.mxu1 %v3572_v11 }
 0x109   :  { %2995 = vmatprep.subr.mxu1 %v3463_v0 }
 0x10a   :  { %2996 = vmatpush3.msra.mxu1 %v3581_v12 }
 0x10b   :  { %2997 = vmatprep.subr.mxu1 %v3463_v0 }
 0x10c   :  { %2998 = vmatpush3.msra.mxu1 %v3590_v13 }
 0x10d   :  { %2999 = vmatprep.subr.mxu1 %v3463_v0 }
 0x10e   :  { %3000 = vmatpush3.msra.mxu1 %v3599_v14 }
 0x10f   :  { %3001 = vmatprep.subr.mxu1 %v3463_v0 }
 0x110   :  { %3002 = vmatpush3.msra.mxu1 %v3608_v15 }
 0x111   :  { %3003 = vmatprep.subr.mxu1 %v3463_v0 }
 0x112   :  { %3004 = vmatpush3.msra.mxu1 %v3617_v16 }
 0x113   :  { %3043 = vmatprep.subr.mxu1 %v3463_v0 }
 0x1b2   :  { %v254_v42 = vpop.f32.mrf.mxu1 }
 0x1b3   :  { %v260_v43 = vadd.f32 %v2521_v41, %v254_v42 }
 0x1b4   :  { %v2937_v44 = vpop.f32.mrf.mxu1 }
 0x1b5   :  { %3433 = vtanh.f32 %v260_v43 }
 0x1c2   :  { %v3434_v45 = vpop.eup %3433 }
 0x1c3   :  { %v263_v46 = vcombine.high %v3434_v45, %v3434_v45  ;;  %v270_v47 = vrot.slane %v3434_v45, %v3669_v26  ;;  %2971 = vmatmul.mubr.f32.vlgmr.msra.gmra.mxu0 %v3434_v45 }
 0x1c4   :  { %3009 = vmatpush3.msra.mxu0 %v3485_v1  ;;  %3040 = vmatprep.mubr.msk.f32.mxu0 %vm3464_vm0, %v3463_v0 }
 0x1c5   :  { %v277_v48 = vrot.slane %v263_v46, %v3669_v26  ;;  %v278_v49 = vcombine.high %v270_v47, %v270_v47  ;;  %v286_v50 = vrot.slane %v270_v47, %v3669_v26  ;;  %2522 = vst.sshfl [vmem:[%s4734_s2 + $0x1] sm:$0x1 pattern:$0x73625140] %v270_v47  ;;  %3010 = vmatprep.subr.mxu0 %v3463_v0 }
 0x1c6   :  { %3011 = vmatpush3.msra.mxu0 %v3490_v2 }
 0x1c7   :  { %v279_v51 = vcombine.high %v277_v48, %v277_v48  ;;  %v293_v52 = vrot.slane %v277_v48, %v3669_v26  ;;  %v300_v53 = vrot.slane %v278_v49, %v3669_v26  ;;  %v308_v54 = vcombine.high %v286_v50, %v286_v50  ;;  %2523 = vst.sshfl [vmem:[%s4734_s2 + $0x11] sm:$0x1 pattern:$0x73625140] %v278_v49 }
 0x1c8   :  { %2524 = vst.sshfl [vmem:[%s4734_s2 + $0x41] sm:$0x1 pattern:$0x73625140] %v277_v48  ;;  %3012 = vmatprep.subr.mxu0 %v3463_v0 }
 0x1c9   :  { %3013 = vmatpush3.msra.mxu0 %v3500_v3  ;;  %v307_v55 = vrot.slane %v279_v51, %v3669_v26  ;;  %v309_v56 = vcombine.high %v293_v52, %v293_v52  ;;  %v310_v57 = vcombine.high %v300_v53, %v300_v53  ;;  %322 = vst [vmem:[%s4734_s2 + $0x21] sm:$0x1] %v308_v54  ;;  %2525 = vst.sshfl [vmem:[%s4734_s2 + $0x51] sm:$0x1 pattern:$0x73625140] %v279_v51 }
 0x1ca   :  { %3014 = vmatprep.subr.mxu0 %v3463_v0  ;;  %v3974_v51 = vld [vmem:[%s4732_s1 + $0x78] sm:$0xff]  ;;  %v3979_v52 = vld [vmem:[%s4732_s1 + $0x70] sm:$0xff]  ;;  %v3986_v53 = vld [vmem:[%s4732_s1 + $0x68] sm:$0xff] }
 0x1cb   :  { %3015 = vmatpush3.msra.mxu0 %v3509_v4  ;;  %v311_v58 = vcombine.high %v307_v55, %v307_v55  ;;  %323 = vst [vmem:[%s4734_s2 + $0x31] sm:$0x1] %v310_v57  ;;  %326 = vst [vmem:[%s4734_s2 + $0x61] sm:$0x1] %v309_v56  ;;  %v3993_v54 = vld [vmem:[%s4732_s1 + $0x60] sm:$0xff]  ;;  %v4000_v55 = vld [vmem:[%s4732_s1 + $0x58] sm:$0xff] }
 0x1cc   :  { %3016 = vmatprep.subr.mxu0 %v3463_v0  ;;  %v4007_v56 = vld [vmem:[%s4732_s1 + $0x50] sm:$0xff]  ;;  %v4014_v57 = vld [vmem:[%s4732_s1 + $0x48] sm:$0xff] }
 0x1cd   :  { %3017 = vmatpush3.msra.mxu0 %v3518_v5  ;;  %327 = vst [vmem:[%s4734_s2 + $0x71] sm:$0x1] %v311_v58  ;;  %v2541_v58 = vld [vmem:[%s4733_s0 + $0x28] sm:$0xff] }
 0x1ce   :  { %3018 = vmatprep.subr.mxu0 %v3463_v0 }
 0x1cf   :  { %3019 = vmatpush3.msra.mxu0 %v3527_v6 }
 0x1d0   :  { %3020 = vmatprep.subr.mxu0 %v3463_v0 }
 0x1d1   :  { %3021 = vmatpush3.msra.mxu0 %v3536_v7 }
 0x1d2   :  { %3022 = vmatprep.subr.mxu0 %v3463_v0 }
 0x1d3   :  { %3023 = vmatpush3.msra.mxu0 %v3545_v8 }
 0x1d4   :  { %3024 = vmatprep.subr.mxu0 %v3463_v0 }
 0x1d5   :  { %3025 = vmatpush3.msra.mxu0 %v3554_v9 }
 0x1d6   :  { %3026 = vmatprep.subr.mxu0 %v3463_v0 }
 0x1d7   :  { %3027 = vmatpush3.msra.mxu0 %v3563_v10 }
 0x1d8   :  { %3028 = vmatprep.subr.mxu0 %v3463_v0 }
 0x1d9   :  { %3029 = vmatpush3.msra.mxu0 %v3572_v11 }
 0x1da   :  { %3030 = vmatprep.subr.mxu0 %v3463_v0 }
 0x1db   :  { %3031 = vmatpush3.msra.mxu0 %v3581_v12 }
 0x1dc   :  { %3032 = vmatprep.subr.mxu0 %v3463_v0 }
 0x1dd   :  { %3033 = vmatpush3.msra.mxu0 %v3590_v13 }
 0x1de   :  { %3034 = vmatprep.subr.mxu0 %v3463_v0 }
 0x1df   :  { %3035 = vmatpush3.msra.mxu0 %v3599_v14 }
 0x1e0   :  { %3036 = vmatprep.subr.mxu0 %v3463_v0 }
 0x1e1   :  { %3037 = vmatpush3.msra.mxu0 %v3608_v15 }
 0x1e2   :  { %3038 = vmatprep.subr.mxu0 %v3463_v0 }
 0x1e3   :  { %3039 = vmatpush3.msra.mxu0 %v3617_v16 }
 0x1e4   :  { %3078 = vmatprep.subr.mxu0 %v3463_v0 }
 0x283   :  { %v410_v60 = vpop.f32.mrf.mxu0 }
 0x284   :  { %v416_v61 = vadd.f32 %v2526_v59, %v410_v60 }
 0x285   :  { %v2972_v62 = vpop.f32.mrf.mxu0 }
 0x286   :  { %3435 = vtanh.f32 %v416_v61 }
 0x293   :  { %v3436_v63 = vpop.eup %3435 }
 0x294   :  { %v419_v17 = vcombine.high %v3436_v63, %v3436_v63  ;;  %v426_v18 = vrot.slane %v3436_v63, %v3669_v26  ;;  %3006 = vmatmul.mubr.f32.vlgmr.msra.gmra.mxu1 %v3436_v63 }
 0x295   :  { %3044 = vmatpush3.msra.mxu1 %v3485_v1  ;;  %3075 = vmatprep.mubr.msk.f32.mxu1 %vm3464_vm0, %v3463_v0 }
 0x296   :  { %v433_v19 = vrot.slane %v419_v17, %v3669_v26  ;;  %v434_v20 = vcombine.high %v426_v18, %v426_v18  ;;  %v442_v21 = vrot.slane %v426_v18, %v3669_v26  ;;  %2527 = vst.sshfl [vmem:[%s4734_s2 + $0x2] sm:$0x1 pattern:$0x73625140] %v426_v18  ;;  %3045 = vmatprep.subr.mxu1 %v3463_v0 }
 0x297   :  { %3046 = vmatpush3.msra.mxu1 %v3490_v2 }
 0x298   :  { %v435_v22 = vcombine.high %v433_v19, %v433_v19  ;;  %v449_v23 = vrot.slane %v433_v19, %v3669_v26  ;;  %v456_v24 = vrot.slane %v434_v20, %v3669_v26  ;;  %v464_v25 = vcombine.high %v442_v21, %v442_v21  ;;  %2528 = vst.sshfl [vmem:[%s4734_s2 + $0x12] sm:$0x1 pattern:$0x73625140] %v434_v20 }
 0x299   :  { %2529 = vst.sshfl [vmem:[%s4734_s2 + $0x42] sm:$0x1 pattern:$0x73625140] %v433_v19  ;;  %3047 = vmatprep.subr.mxu1 %v3463_v0 }
 0x29a   :  { %3048 = vmatpush3.msra.mxu1 %v3500_v3  ;;  %v463_v27 = vrot.slane %v435_v22, %v3669_v26  ;;  %v465_v28 = vcombine.high %v449_v23, %v449_v23  ;;  %v466_v29 = vcombine.high %v456_v24, %v456_v24  ;;  %478 = vst [vmem:[%s4734_s2 + $0x22] sm:$0x1] %v464_v25  ;;  %2530 = vst.sshfl [vmem:[%s4734_s2 + $0x52] sm:$0x1 pattern:$0x73625140] %v435_v22 }
 0x29b   :  { %3049 = vmatprep.subr.mxu1 %v3463_v0 }
 0x29c   :  { %3050 = vmatpush3.msra.mxu1 %v3509_v4  ;;  %v467_v30 = vcombine.high %v463_v27, %v463_v27  ;;  %479 = vst [vmem:[%s4734_s2 + $0x32] sm:$0x1] %v466_v29  ;;  %482 = vst [vmem:[%s4734_s2 + $0x62] sm:$0x1] %v465_v28 }
 0x29d   :  { %3051 = vmatprep.subr.mxu1 %v3463_v0 }
 0x29e   :  { %3052 = vmatpush3.msra.mxu1 %v3518_v5  ;;  %483 = vst [vmem:[%s4734_s2 + $0x72] sm:$0x1] %v467_v30  ;;  %v4072_v30 = vld [vmem:[%s4732_s1 + $0x40] sm:$0xff] }
 0x29f   :  { %3053 = vmatprep.subr.mxu1 %v3463_v0 }
 0x2a0   :  { %3054 = vmatpush3.msra.mxu1 %v3527_v6 }
 0x2a1   :  { %3055 = vmatprep.subr.mxu1 %v3463_v0 }
 0x2a2   :  { %3056 = vmatpush3.msra.mxu1 %v3536_v7 }
 0x2a3   :  { %3057 = vmatprep.subr.mxu1 %v3463_v0 }
 0x2a4   :  { %3058 = vmatpush3.msra.mxu1 %v3545_v8 }
 0x2a5   :  { %3059 = vmatprep.subr.mxu1 %v3463_v0 }
 0x2a6   :  { %3060 = vmatpush3.msra.mxu1 %v3554_v9 }
 0x2a7   :  { %3061 = vmatprep.subr.mxu1 %v3463_v0 }
 0x2a8   :  { %3062 = vmatpush3.msra.mxu1 %v3563_v10 }
 0x2a9   :  { %3063 = vmatprep.subr.mxu1 %v3463_v0 }
 0x2aa   :  { %3064 = vmatpush3.msra.mxu1 %v3572_v11 }
 0x2ab   :  { %3065 = vmatprep.subr.mxu1 %v3463_v0 }
 0x2ac   :  { %3066 = vmatpush3.msra.mxu1 %v3581_v12 }
 0x2ad   :  { %3067 = vmatprep.subr.mxu1 %v3463_v0 }
 0x2ae   :  { %3068 = vmatpush3.msra.mxu1 %v3590_v13 }
 0x2af   :  { %3069 = vmatprep.subr.mxu1 %v3463_v0 }
 0x2b0   :  { %3070 = vmatpush3.msra.mxu1 %v3599_v14 }
 0x2b1   :  { %3071 = vmatprep.subr.mxu1 %v3463_v0 }
 0x2b2   :  { %3072 = vmatpush3.msra.mxu1 %v3608_v15 }
 0x2b3   :  { %3073 = vmatprep.subr.mxu1 %v3463_v0 }
 0x2b4   :  { %3074 = vmatpush3.msra.mxu1 %v3617_v16 }
 0x2b5   :  { %3113 = vmatprep.subr.mxu1 %v3463_v0 }
 0x354   :  { %v566_v32 = vpop.f32.mrf.mxu1 }
 0x355   :  { %v572_v33 = vadd.f32 %v2531_v31, %v566_v32  ;;  %v4080_v31 = vld [vmem:[%s4732_s1 + $0x38] sm:$0xff]  ;;  %v4089_v32 = vld [vmem:[%s4732_s1 + $0x30] sm:$0xff] }
 0x356   :  { %v3007_v34 = vpop.f32.mrf.mxu1 }
 0x357   :  { %3437 = vtanh.f32 %v572_v33  ;;  %v4098_v33 = vld [vmem:[%s4732_s1 + $0x28] sm:$0xff]  ;;  %v4107_v34 = vld [vmem:[%s4732_s1 + $0x20] sm:$0xff] }
 0x364   :  { %v3438_v35 = vpop.eup %3437 }
 0x365   :  { %v575_v36 = vcombine.high %v3438_v35, %v3438_v35  ;;  %v582_v37 = vrot.slane %v3438_v35, %v3669_v26  ;;  %3041 = vmatmul.mubr.f32.vlgmr.msra.gmra.mxu0 %v3438_v35  ;;  %v4116_v35 = vld [vmem:[%s4732_s1 + $0x18] sm:$0xff] }
 0x366   :  { %3079 = vmatpush3.msra.mxu0 %v3485_v1  ;;  %3110 = vmatprep.mubr.msk.f32.mxu0 %vm3464_vm0, %v3463_v0 }
 0x367   :  { %v589_v38 = vrot.slane %v575_v36, %v3669_v26  ;;  %v590_v39 = vcombine.high %v582_v37, %v582_v37  ;;  %v598_v40 = vrot.slane %v582_v37, %v3669_v26  ;;  %2532 = vst.sshfl [vmem:[%s4734_s2 + $0x3] sm:$0x1 pattern:$0x73625140] %v582_v37  ;;  %3080 = vmatprep.subr.mxu0 %v3463_v0  ;;  %v4125_v36 = vld [vmem:[%s4732_s1 + $0x10] sm:$0xff]  ;;  %v4134_v37 = vld [vmem:[%s4732_s1 + $0x8] sm:$0xff] }
 0x368   :  { %3081 = vmatpush3.msra.mxu0 %v3490_v2 }
 0x369   :  { %v591_v41 = vcombine.high %v589_v38, %v589_v38  ;;  %v605_v42 = vrot.slane %v589_v38, %v3669_v26  ;;  %v612_v1 = vrot.slane %v590_v39, %v3669_v26  ;;  %v620_v43 = vcombine.high %v598_v40, %v598_v40  ;;  %2533 = vst.sshfl [vmem:[%s4734_s2 + $0x13] sm:$0x1 pattern:$0x73625140] %v590_v39  ;;  %v2546_v39 = vld [vmem:[%s4733_s0 + $0x30] sm:$0xff] }
 0x36a   :  { %2534 = vst.sshfl [vmem:[%s4734_s2 + $0x43] sm:$0x1 pattern:$0x73625140] %v589_v38  ;;  %3082 = vmatprep.subr.mxu0 %v3463_v0  ;;  %v4143_v38 = vld [vmem:[%s4732_s1] sm:$0xff] }
 0x36b   :  { %3083 = vmatpush3.msra.mxu0 %v3500_v3  ;;  %v619_v2 = vrot.slane %v591_v41, %v3669_v26  ;;  %v621_v44 = vcombine.high %v605_v42, %v605_v42  ;;  %v622_v45 = vcombine.high %v612_v1, %v612_v1  ;;  %634 = vst [vmem:[%s4734_s2 + $0x23] sm:$0x1] %v620_v43  ;;  %2535 = vst.sshfl [vmem:[%s4734_s2 + $0x53] sm:$0x1 pattern:$0x73625140] %v591_v41 }
 0x36c   :  { %3084 = vmatprep.subr.mxu0 %v3463_v0  ;;  %v2536_v3 = vld [vmem:[%s4733_s0 + $0x20] sm:$0xff] }
 0x36d   :  { %3085 = vmatpush3.msra.mxu0 %v3509_v4  ;;  %v623_v46 = vcombine.high %v619_v2, %v619_v2  ;;  %635 = vst [vmem:[%s4734_s2 + $0x33] sm:$0x1] %v622_v45  ;;  %638 = vst [vmem:[%s4734_s2 + $0x63] sm:$0x1] %v621_v44 }
 0x36e   :  { %3086 = vmatprep.subr.mxu0 %v3463_v0 }
 0x36f   :  { %3087 = vmatpush3.msra.mxu0 %v3518_v5  ;;  %639 = vst [vmem:[%s4734_s2 + $0x73] sm:$0x1] %v623_v46 }
 0x370   :  { %3088 = vmatprep.subr.mxu0 %v3463_v0 }
 0x371   :  { %3089 = vmatpush3.msra.mxu0 %v3527_v6 }
 0x372   :  { %3090 = vmatprep.subr.mxu0 %v3463_v0 }
 0x373   :  { %3091 = vmatpush3.msra.mxu0 %v3536_v7 }
 0x374   :  { %3092 = vmatprep.subr.mxu0 %v3463_v0 }
 0x375   :  { %3093 = vmatpush3.msra.mxu0 %v3545_v8 }
 0x376   :  { %3094 = vmatprep.subr.mxu0 %v3463_v0 }
 0x377   :  { %3095 = vmatpush3.msra.mxu0 %v3554_v9 }
 0x378   :  { %3096 = vmatprep.subr.mxu0 %v3463_v0 }
 0x379   :  { %3097 = vmatpush3.msra.mxu0 %v3563_v10 }
 0x37a   :  { %3098 = vmatprep.subr.mxu0 %v3463_v0 }
 0x37b   :  { %3099 = vmatpush3.msra.mxu0 %v3572_v11 }
 0x37c   :  { %3100 = vmatprep.subr.mxu0 %v3463_v0 }
 0x37d   :  { %3101 = vmatpush3.msra.mxu0 %v3581_v12 }
 0x37e   :  { %3102 = vmatprep.subr.mxu0 %v3463_v0 }
 0x37f   :  { %3103 = vmatpush3.msra.mxu0 %v3590_v13 }
 0x380   :  { %3104 = vmatprep.subr.mxu0 %v3463_v0 }
 0x381   :  { %3105 = vmatpush3.msra.mxu0 %v3599_v14 }
 0x382   :  { %3106 = vmatprep.subr.mxu0 %v3463_v0 }
 0x383   :  { %3107 = vmatpush3.msra.mxu0 %v3608_v15 }
 0x384   :  { %3108 = vmatprep.subr.mxu0 %v3463_v0 }
 0x385   :  { %3109 = vmatpush3.msra.mxu0 %v3617_v16 }
 0x386   :  { %3148 = vmatprep.subr.mxu0 %v3463_v0 }
 0x425   :  { %v722_v4 = vpop.f32.mrf.mxu0 }
 0x426   :  { %v728_v5 = vadd.f32 %v2536_v3, %v722_v4 }
 0x427   :  { %v3042_v6 = vpop.f32.mrf.mxu0 }
 0x428   :  { %3439 = vtanh.f32 %v728_v5 }
 0x435   :  { %v3440_v7 = vpop.eup %3439 }
 0x436   :  { %v731_v8 = vcombine.high %v3440_v7, %v3440_v7  ;;  %v738_v9 = vrot.slane %v3440_v7, %v3669_v26  ;;  %3076 = vmatmul.mubr.f32.vlgmr.msra.gmra.mxu1 %v3440_v7 }
 0x437   :  { %3145 = vmatprep.mubr.msk.f32.mxu1 %vm3464_vm0, %v3463_v0  ;;  %3114 = vmatpush3.msra.mxu1 %v3974_v51 }
 0x438   :  { %v745_v10 = vrot.slane %v731_v8, %v3669_v26  ;;  %v746_v11 = vcombine.high %v738_v9, %v738_v9  ;;  %v754_v12 = vrot.slane %v738_v9, %v3669_v26  ;;  %2537 = vst.sshfl [vmem:[%s4734_s2 + $0x4] sm:$0x1 pattern:$0x73625140] %v738_v9  ;;  %3115 = vmatprep.subr.mxu1 %v3463_v0 }
 0x439   :  { %3116 = vmatpush3.msra.mxu1 %v3979_v52 }
 0x43a   :  { %v747_v13 = vcombine.high %v745_v10, %v745_v10  ;;  %v761_v14 = vrot.slane %v745_v10, %v3669_v26  ;;  %v768_v15 = vrot.slane %v746_v11, %v3669_v26  ;;  %v776_v16 = vcombine.high %v754_v12, %v754_v12  ;;  %2538 = vst.sshfl [vmem:[%s4734_s2 + $0x14] sm:$0x1 pattern:$0x73625140] %v746_v11  ;;  %v2551_v11 = vld [vmem:[%s4733_s0 + $0x38] sm:$0xff] }
 0x43b   :  { %2539 = vst.sshfl [vmem:[%s4734_s2 + $0x44] sm:$0x1 pattern:$0x73625140] %v745_v10  ;;  %3117 = vmatprep.subr.mxu1 %v3463_v0 }
 0x43c   :  { %v775_v47 = vrot.slane %v747_v13, %v3669_v26  ;;  %v777_v48 = vcombine.high %v761_v14, %v761_v14  ;;  %v778_v49 = vcombine.high %v768_v15, %v768_v15  ;;  %790 = vst [vmem:[%s4734_s2 + $0x24] sm:$0x1] %v776_v16  ;;  %2540 = vst.sshfl [vmem:[%s4734_s2 + $0x54] sm:$0x1 pattern:$0x73625140] %v747_v13  ;;  %3118 = vmatpush3.msra.mxu1 %v3986_v53 }
 0x43d   :  { %3119 = vmatprep.subr.mxu1 %v3463_v0 }
 0x43e   :  { %v779_v50 = vcombine.high %v775_v47, %v775_v47  ;;  %791 = vst [vmem:[%s4734_s2 + $0x34] sm:$0x1] %v778_v49  ;;  %794 = vst [vmem:[%s4734_s2 + $0x64] sm:$0x1] %v777_v48  ;;  %3120 = vmatpush3.msra.mxu1 %v3993_v54 }
 0x43f   :  { %3121 = vmatprep.subr.mxu1 %v3463_v0 }
 0x440   :  { %795 = vst [vmem:[%s4734_s2 + $0x74] sm:$0x1] %v779_v50  ;;  %3122 = vmatpush3.msra.mxu1 %v4000_v55 }
 0x441   :  { %3123 = vmatprep.subr.mxu1 %v3463_v0 }
 0x442   :  { %3124 = vmatpush3.msra.mxu1 %v4007_v56 }
 0x443   :  { %3125 = vmatprep.subr.mxu1 %v3463_v0 }
 0x444   :  { %3126 = vmatpush3.msra.mxu1 %v4014_v57 }
 0x445   :  { %3127 = vmatprep.subr.mxu1 %v3463_v0 }
 0x446   :  { %3128 = vmatpush3.msra.mxu1 %v4072_v30 }
 0x447   :  { %3129 = vmatprep.subr.mxu1 %v3463_v0 }
 0x448   :  { %3130 = vmatpush3.msra.mxu1 %v4080_v31 }
 0x449   :  { %3131 = vmatprep.subr.mxu1 %v3463_v0 }
 0x44a   :  { %3132 = vmatpush3.msra.mxu1 %v4089_v32 }
 0x44b   :  { %3133 = vmatprep.subr.mxu1 %v3463_v0 }
 0x44c   :  { %3134 = vmatpush3.msra.mxu1 %v4098_v33 }
 0x44d   :  { %3135 = vmatprep.subr.mxu1 %v3463_v0 }
 0x44e   :  { %3136 = vmatpush3.msra.mxu1 %v4107_v34 }
 0x44f   :  { %3137 = vmatprep.subr.mxu1 %v3463_v0 }
 0x450   :  { %3138 = vmatpush3.msra.mxu1 %v4116_v35 }
 0x451   :  { %3139 = vmatprep.subr.mxu1 %v3463_v0 }
 0x452   :  { %3140 = vmatpush3.msra.mxu1 %v4125_v36 }
 0x453   :  { %3141 = vmatprep.subr.mxu1 %v3463_v0 }
 0x454   :  { %3142 = vmatpush3.msra.mxu1 %v4134_v37 }
 0x455   :  { %3143 = vmatprep.subr.mxu1 %v3463_v0 }
 0x456   :  { %3144 = vmatpush3.msra.mxu1 %v4143_v38 }
 0x457   :  { %3183 = vmatprep.subr.mxu1 %v3463_v0 }
 0x4f6   :  { %v878_v59 = vpop.f32.mrf.mxu1 }
 0x4f7   :  { %v884_v60 = vadd.f32 %v2541_v58, %v878_v59 }
 0x4f8   :  { %v3077_v61 = vpop.f32.mrf.mxu1 }
 0x4f9   :  { %3441 = vtanh.f32 %v884_v60 }
 0x506   :  { %v3442_v62 = vpop.eup %3441 }
 0x507   :  { %v887_v63 = vcombine.high %v3442_v62, %v3442_v62  ;;  %v894_v17 = vrot.slane %v3442_v62, %v3669_v26  ;;  %3111 = vmatmul.mubr.f32.vlgmr.msra.gmra.mxu0 %v3442_v62 }
 0x508   :  { %3149 = vmatpush3.msra.mxu0 %v3974_v51  ;;  %3180 = vmatprep.mubr.msk.f32.mxu0 %vm3464_vm0, %v3463_v0 }
 0x509   :  { %v901_v18 = vrot.slane %v887_v63, %v3669_v26  ;;  %v902_v19 = vcombine.high %v894_v17, %v894_v17  ;;  %v910_v20 = vrot.slane %v894_v17, %v3669_v26  ;;  %2542 = vst.sshfl [vmem:[%s4734_s2 + $0x5] sm:$0x1 pattern:$0x73625140] %v894_v17  ;;  %3150 = vmatprep.subr.mxu0 %v3463_v0 }
 0x50a   :  { %3151 = vmatpush3.msra.mxu0 %v3979_v52 }
 0x50b   :  { %v903_v21 = vcombine.high %v901_v18, %v901_v18  ;;  %v917_v22 = vrot.slane %v901_v18, %v3669_v26  ;;  %v924_v23 = vrot.slane %v902_v19, %v3669_v26  ;;  %v932_v24 = vcombine.high %v910_v20, %v910_v20  ;;  %2543 = vst.sshfl [vmem:[%s4734_s2 + $0x15] sm:$0x1 pattern:$0x73625140] %v902_v19  ;;  %v2556_v19 = vld [vmem:[%s4733_s0 + $0x40] sm:$0xff] }
 0x50c   :  { %2544 = vst.sshfl [vmem:[%s4734_s2 + $0x45] sm:$0x1 pattern:$0x73625140] %v901_v18  ;;  %3152 = vmatprep.subr.mxu0 %v3463_v0 }
 0x50d   :  { %3153 = vmatpush3.msra.mxu0 %v3986_v53  ;;  %v931_v25 = vrot.slane %v903_v21, %v3669_v26  ;;  %v933_v27 = vcombine.high %v917_v22, %v917_v22  ;;  %v934_v28 = vcombine.high %v924_v23, %v924_v23  ;;  %946 = vst [vmem:[%s4734_s2 + $0x25] sm:$0x1] %v932_v24  ;;  %2545 = vst.sshfl [vmem:[%s4734_s2 + $0x55] sm:$0x1 pattern:$0x73625140] %v903_v21 }
 0x50e   :  { %3154 = vmatprep.subr.mxu0 %v3463_v0 }
 0x50f   :  { %3155 = vmatpush3.msra.mxu0 %v3993_v54  ;;  %v935_v29 = vcombine.high %v931_v25, %v931_v25  ;;  %947 = vst [vmem:[%s4734_s2 + $0x35] sm:$0x1] %v934_v28  ;;  %950 = vst [vmem:[%s4734_s2 + $0x65] sm:$0x1] %v933_v27 }
 0x510   :  { %3156 = vmatprep.subr.mxu0 %v3463_v0 }
 0x511   :  { %3157 = vmatpush3.msra.mxu0 %v4000_v55  ;;  %951 = vst [vmem:[%s4734_s2 + $0x75] sm:$0x1] %v935_v29 }
 0x512   :  { %3158 = vmatprep.subr.mxu0 %v3463_v0 }
 0x513   :  { %3159 = vmatpush3.msra.mxu0 %v4007_v56 }
 0x514   :  { %3160 = vmatprep.subr.mxu0 %v3463_v0 }
 0x515   :  { %3161 = vmatpush3.msra.mxu0 %v4014_v57 }
 0x516   :  { %3162 = vmatprep.subr.mxu0 %v3463_v0 }
 0x517   :  { %3163 = vmatpush3.msra.mxu0 %v4072_v30 }
 0x518   :  { %3164 = vmatprep.subr.mxu0 %v3463_v0 }
 0x519   :  { %3165 = vmatpush3.msra.mxu0 %v4080_v31 }
 0x51a   :  { %3166 = vmatprep.subr.mxu0 %v3463_v0 }
 0x51b   :  { %3167 = vmatpush3.msra.mxu0 %v4089_v32 }
 0x51c   :  { %3168 = vmatprep.subr.mxu0 %v3463_v0 }
 0x51d   :  { %3169 = vmatpush3.msra.mxu0 %v4098_v33 }
 0x51e   :  { %3170 = vmatprep.subr.mxu0 %v3463_v0 }
 0x51f   :  { %3171 = vmatpush3.msra.mxu0 %v4107_v34 }
 0x520   :  { %3172 = vmatprep.subr.mxu0 %v3463_v0 }
 0x521   :  { %3173 = vmatpush3.msra.mxu0 %v4116_v35 }
 0x522   :  { %3174 = vmatprep.subr.mxu0 %v3463_v0 }
 0x523   :  { %3175 = vmatpush3.msra.mxu0 %v4125_v36 }
 0x524   :  { %3176 = vmatprep.subr.mxu0 %v3463_v0 }
 0x525   :  { %3177 = vmatpush3.msra.mxu0 %v4134_v37 }
 0x526   :  { %3178 = vmatprep.subr.mxu0 %v3463_v0 }
 0x527   :  { %3179 = vmatpush3.msra.mxu0 %v4143_v38 }
 0x528   :  { %3218 = vmatprep.subr.mxu0 %v3463_v0 }
 0x5c7   :  { %v1034_v40 = vpop.f32.mrf.mxu0 }
 0x5c8   :  { %v1040_v41 = vadd.f32 %v2546_v39, %v1034_v40 }
 0x5c9   :  { %v3112_v42 = vpop.f32.mrf.mxu0 }
 0x5ca   :  { %3443 = vtanh.f32 %v1040_v41 }
 0x5d7   :  { %v3444_v1 = vpop.eup %3443 }
 0x5d8   :  { %v1043_v43 = vcombine.high %v3444_v1, %v3444_v1  ;;  %v1050_v2 = vrot.slane %v3444_v1, %v3669_v26  ;;  %3146 = vmatmul.mubr.f32.vlgmr.msra.gmra.mxu1 %v3444_v1 }
 0x5d9   :  { %3184 = vmatpush3.msra.mxu1 %v3974_v51  ;;  %3215 = vmatprep.mubr.msk.f32.mxu1 %vm3464_vm0, %v3463_v0 }
 0x5da   :  { %v1057_v44 = vrot.slane %v1043_v43, %v3669_v26  ;;  %v1058_v45 = vcombine.high %v1050_v2, %v1050_v2  ;;  %v1066_v46 = vrot.slane %v1050_v2, %v3669_v26  ;;  %2547 = vst.sshfl [vmem:[%s4734_s2 + $0x6] sm:$0x1 pattern:$0x73625140] %v1050_v2  ;;  %3185 = vmatprep.subr.mxu1 %v3463_v0 }
 0x5db   :  { %3186 = vmatpush3.msra.mxu1 %v3979_v52 }
 0x5dc   :  { %v1059_v3 = vcombine.high %v1057_v44, %v1057_v44  ;;  %v1073_v4 = vrot.slane %v1057_v44, %v3669_v26  ;;  %v1080_v5 = vrot.slane %v1058_v45, %v3669_v26  ;;  %v1088_v6 = vcombine.high %v1066_v46, %v1066_v46  ;;  %2548 = vst.sshfl [vmem:[%s4734_s2 + $0x16] sm:$0x1 pattern:$0x73625140] %v1058_v45  ;;  %v2561_v45 = vld [vmem:[%s4733_s0 + $0x48] sm:$0xff] }
 0x5dd   :  { %2549 = vst.sshfl [vmem:[%s4734_s2 + $0x46] sm:$0x1 pattern:$0x73625140] %v1057_v44  ;;  %3187 = vmatprep.subr.mxu1 %v3463_v0 }
 0x5de   :  { %3188 = vmatpush3.msra.mxu1 %v3986_v53  ;;  %v1087_v7 = vrot.slane %v1059_v3, %v3669_v26  ;;  %v1089_v8 = vcombine.high %v1073_v4, %v1073_v4  ;;  %v1090_v9 = vcombine.high %v1080_v5, %v1080_v5  ;;  %1102 = vst [vmem:[%s4734_s2 + $0x26] sm:$0x1] %v1088_v6  ;;  %2550 = vst.sshfl [vmem:[%s4734_s2 + $0x56] sm:$0x1 pattern:$0x73625140] %v1059_v3 }
 0x5df   :  { %3189 = vmatprep.subr.mxu1 %v3463_v0 }
 0x5e0   :  { %3190 = vmatpush3.msra.mxu1 %v3993_v54  ;;  %v1091_v10 = vcombine.high %v1087_v7, %v1087_v7  ;;  %1103 = vst [vmem:[%s4734_s2 + $0x36] sm:$0x1] %v1090_v9  ;;  %1106 = vst [vmem:[%s4734_s2 + $0x66] sm:$0x1] %v1089_v8 }
 0x5e1   :  { %3191 = vmatprep.subr.mxu1 %v3463_v0 }
 0x5e2   :  { %3192 = vmatpush3.msra.mxu1 %v4000_v55  ;;  %1107 = vst [vmem:[%s4734_s2 + $0x76] sm:$0x1] %v1091_v10 }
 0x5e3   :  { %3193 = vmatprep.subr.mxu1 %v3463_v0 }
 0x5e4   :  { %3194 = vmatpush3.msra.mxu1 %v4007_v56 }
 0x5e5   :  { %3195 = vmatprep.subr.mxu1 %v3463_v0 }
 0x5e6   :  { %3196 = vmatpush3.msra.mxu1 %v4014_v57 }
 0x5e7   :  { %3197 = vmatprep.subr.mxu1 %v3463_v0 }
 0x5e8   :  { %3198 = vmatpush3.msra.mxu1 %v4072_v30 }
 0x5e9   :  { %3199 = vmatprep.subr.mxu1 %v3463_v0 }
 0x5ea   :  { %3200 = vmatpush3.msra.mxu1 %v4080_v31 }
 0x5eb   :  { %3201 = vmatprep.subr.mxu1 %v3463_v0 }
 0x5ec   :  { %3202 = vmatpush3.msra.mxu1 %v4089_v32 }
 0x5ed   :  { %3203 = vmatprep.subr.mxu1 %v3463_v0 }
 0x5ee   :  { %3204 = vmatpush3.msra.mxu1 %v4098_v33 }
 0x5ef   :  { %3205 = vmatprep.subr.mxu1 %v3463_v0 }
 0x5f0   :  { %3206 = vmatpush3.msra.mxu1 %v4107_v34 }
 0x5f1   :  { %3207 = vmatprep.subr.mxu1 %v3463_v0 }
 0x5f2   :  { %3208 = vmatpush3.msra.mxu1 %v4116_v35 }
 0x5f3   :  { %3209 = vmatprep.subr.mxu1 %v3463_v0 }
 0x5f4   :  { %3210 = vmatpush3.msra.mxu1 %v4125_v36 }
 0x5f5   :  { %3211 = vmatprep.subr.mxu1 %v3463_v0 }
 0x5f6   :  { %3212 = vmatpush3.msra.mxu1 %v4134_v37 }
 0x5f7   :  { %3213 = vmatprep.subr.mxu1 %v3463_v0 }
 0x5f8   :  { %3214 = vmatpush3.msra.mxu1 %v4143_v38 }
 0x5f9   :  { %3253 = vmatprep.subr.mxu1 %v3463_v0 }
 0x698   :  { %v1190_v12 = vpop.f32.mrf.mxu1 }
 0x699   :  { %v1196_v13 = vadd.f32 %v2551_v11, %v1190_v12 }
 0x69a   :  { %v3147_v14 = vpop.f32.mrf.mxu1 }
 0x69b   :  { %3445 = vtanh.f32 %v1196_v13 }
 0x6a8   :  { %v3446_v15 = vpop.eup %3445 }
 0x6a9   :  { %v1199_v16 = vcombine.high %v3446_v15, %v3446_v15  ;;  %v1206_v47 = vrot.slane %v3446_v15, %v3669_v26  ;;  %3181 = vmatmul.mubr.f32.vlgmr.msra.gmra.mxu0 %v3446_v15 }
 0x6aa   :  { %3219 = vmatpush3.msra.mxu0 %v3974_v51  ;;  %3250 = vmatprep.mubr.msk.f32.mxu0 %vm3464_vm0, %v3463_v0 }
 0x6ab   :  { %v1213_v48 = vrot.slane %v1199_v16, %v3669_v26  ;;  %v1214_v49 = vcombine.high %v1206_v47, %v1206_v47  ;;  %v1222_v50 = vrot.slane %v1206_v47, %v3669_v26  ;;  %2552 = vst.sshfl [vmem:[%s4734_s2 + $0x7] sm:$0x1 pattern:$0x73625140] %v1206_v47  ;;  %3220 = vmatprep.subr.mxu0 %v3463_v0 }
 0x6ac   :  { %3221 = vmatpush3.msra.mxu0 %v3979_v52 }
 0x6ad   :  { %v1215_v58 = vcombine.high %v1213_v48, %v1213_v48  ;;  %v1229_v59 = vrot.slane %v1213_v48, %v3669_v26  ;;  %v1236_v60 = vrot.slane %v1214_v49, %v3669_v26  ;;  %v1244_v61 = vcombine.high %v1222_v50, %v1222_v50  ;;  %2553 = vst.sshfl [vmem:[%s4734_s2 + $0x17] sm:$0x1 pattern:$0x73625140] %v1214_v49  ;;  %v2566_v49 = vld [vmem:[%s4733_s0 + $0x50] sm:$0xff] }
 0x6ae   :  { %2554 = vst.sshfl [vmem:[%s4734_s2 + $0x47] sm:$0x1 pattern:$0x73625140] %v1213_v48  ;;  %3222 = vmatprep.subr.mxu0 %v3463_v0 }
 0x6af   :  { %3223 = vmatpush3.msra.mxu0 %v3986_v53  ;;  %v1243_v62 = vrot.slane %v1215_v58, %v3669_v26  ;;  %v1245_v63 = vcombine.high %v1229_v59, %v1229_v59  ;;  %v1246_v17 = vcombine.high %v1236_v60, %v1236_v60  ;;  %1258 = vst [vmem:[%s4734_s2 + $0x27] sm:$0x1] %v1244_v61  ;;  %2555 = vst.sshfl [vmem:[%s4734_s2 + $0x57] sm:$0x1 pattern:$0x73625140] %v1215_v58 }
 0x6b0   :  { %3224 = vmatprep.subr.mxu0 %v3463_v0 }
 0x6b1   :  { %3225 = vmatpush3.msra.mxu0 %v3993_v54  ;;  %v1247_v18 = vcombine.high %v1243_v62, %v1243_v62  ;;  %1259 = vst [vmem:[%s4734_s2 + $0x37] sm:$0x1] %v1246_v17  ;;  %1262 = vst [vmem:[%s4734_s2 + $0x67] sm:$0x1] %v1245_v63 }
 0x6b2   :  { %3226 = vmatprep.subr.mxu0 %v3463_v0 }
 0x6b3   :  { %3227 = vmatpush3.msra.mxu0 %v4000_v55  ;;  %1263 = vst [vmem:[%s4734_s2 + $0x77] sm:$0x1] %v1247_v18 }
 0x6b4   :  { %3228 = vmatprep.subr.mxu0 %v3463_v0 }
 0x6b5   :  { %3229 = vmatpush3.msra.mxu0 %v4007_v56 }
 0x6b6   :  { %3230 = vmatprep.subr.mxu0 %v3463_v0 }
 0x6b7   :  { %3231 = vmatpush3.msra.mxu0 %v4014_v57 }
 0x6b8   :  { %3232 = vmatprep.subr.mxu0 %v3463_v0 }
 0x6b9   :  { %3233 = vmatpush3.msra.mxu0 %v4072_v30 }
 0x6ba   :  { %3234 = vmatprep.subr.mxu0 %v3463_v0 }
 0x6bb   :  { %3235 = vmatpush3.msra.mxu0 %v4080_v31 }
 0x6bc   :  { %3236 = vmatprep.subr.mxu0 %v3463_v0 }
 0x6bd   :  { %3237 = vmatpush3.msra.mxu0 %v4089_v32 }
 0x6be   :  { %3238 = vmatprep.subr.mxu0 %v3463_v0 }
 0x6bf   :  { %3239 = vmatpush3.msra.mxu0 %v4098_v33 }
 0x6c0   :  { %3240 = vmatprep.subr.mxu0 %v3463_v0 }
 0x6c1   :  { %3241 = vmatpush3.msra.mxu0 %v4107_v34 }
 0x6c2   :  { %3242 = vmatprep.subr.mxu0 %v3463_v0 }
 0x6c3   :  { %3243 = vmatpush3.msra.mxu0 %v4116_v35 }
 0x6c4   :  { %3244 = vmatprep.subr.mxu0 %v3463_v0 }
 0x6c5   :  { %3245 = vmatpush3.msra.mxu0 %v4125_v36 }
 0x6c6   :  { %3246 = vmatprep.subr.mxu0 %v3463_v0 }
 0x6c7   :  { %3247 = vmatpush3.msra.mxu0 %v4134_v37 }
 0x6c8   :  { %3248 = vmatprep.subr.mxu0 %v3463_v0 }
 0x6c9   :  { %3249 = vmatpush3.msra.mxu0 %v4143_v38 }
 0x6ca   :  { %3288 = vmatprep.subr.mxu0 %v3463_v0 }
 0x769   :  { %v1346_v20 = vpop.f32.mrf.mxu0 }
 0x76a   :  { %v1352_v21 = vadd.f32 %v2556_v19, %v1346_v20 }
 0x76b   :  { %v3182_v22 = vpop.f32.mrf.mxu0 }
 0x76c   :  { %3447 = vtanh.f32 %v1352_v21 }
 0x779   :  { %v3448_v23 = vpop.eup %3447 }
 0x77a   :  { %v1355_v24 = vcombine.high %v3448_v23, %v3448_v23  ;;  %v1362_v25 = vrot.slane %v3448_v23, %v3669_v26  ;;  %3216 = vmatmul.mubr.f32.vlgmr.msra.gmra.mxu1 %v3448_v23 }
 0x77b   :  { %3254 = vmatpush3.msra.mxu1 %v3974_v51  ;;  %3285 = vmatprep.mubr.msk.f32.mxu1 %vm3464_vm0, %v3463_v0 }
 0x77c   :  { %v1369_v27 = vrot.slane %v1355_v24, %v3669_v26  ;;  %v1370_v28 = vcombine.high %v1362_v25, %v1362_v25  ;;  %v1378_v29 = vrot.slane %v1362_v25, %v3669_v26  ;;  %2557 = vst.sshfl [vmem:[%s4734_s2 + $0x8] sm:$0x1 pattern:$0x73625140] %v1362_v25  ;;  %3255 = vmatprep.subr.mxu1 %v3463_v0 }
 0x77d   :  { %3256 = vmatpush3.msra.mxu1 %v3979_v52 }
 0x77e   :  { %v1371_v39 = vcombine.high %v1369_v27, %v1369_v27  ;;  %v1385_v40 = vrot.slane %v1369_v27, %v3669_v26  ;;  %v1392_v41 = vrot.slane %v1370_v28, %v3669_v26  ;;  %v1400_v42 = vcombine.high %v1378_v29, %v1378_v29  ;;  %2558 = vst.sshfl [vmem:[%s4734_s2 + $0x18] sm:$0x1 pattern:$0x73625140] %v1370_v28 }
 0x77f   :  { %2559 = vst.sshfl [vmem:[%s4734_s2 + $0x48] sm:$0x1 pattern:$0x73625140] %v1369_v27  ;;  %3257 = vmatprep.subr.mxu1 %v3463_v0 }
 0x780   :  { %3258 = vmatpush3.msra.mxu1 %v3986_v53  ;;  %v1399_v1 = vrot.slane %v1371_v39, %v3669_v26  ;;  %v1401_v43 = vcombine.high %v1385_v40, %v1385_v40  ;;  %v1402_v2 = vcombine.high %v1392_v41, %v1392_v41  ;;  %1414 = vst [vmem:[%s4734_s2 + $0x28] sm:$0x1] %v1400_v42  ;;  %2560 = vst.sshfl [vmem:[%s4734_s2 + $0x58] sm:$0x1 pattern:$0x73625140] %v1371_v39 }
 0x781   :  { %3259 = vmatprep.subr.mxu1 %v3463_v0  ;;  %v2215_v39 = vld [vmem:[%s4732_s1 + $0x78] sm:$0xff]  ;;  %v2214_v40 = vld [vmem:[%s4732_s1 + $0x70] sm:$0xff]  ;;  %v2213_v41 = vld [vmem:[%s4732_s1 + $0x68] sm:$0xff] }
 0x782   :  { %3260 = vmatpush3.msra.mxu1 %v3993_v54  ;;  %v1403_v44 = vcombine.high %v1399_v1, %v1399_v1  ;;  %1415 = vst [vmem:[%s4734_s2 + $0x38] sm:$0x1] %v1402_v2  ;;  %1418 = vst [vmem:[%s4734_s2 + $0x68] sm:$0x1] %v1401_v43  ;;  %v2212_v42 = vld [vmem:[%s4732_s1 + $0x60] sm:$0xff]  ;;  %v2211_v1 = vld [vmem:[%s4732_s1 + $0x58] sm:$0xff] }
 0x783   :  { %3261 = vmatprep.subr.mxu1 %v3463_v0  ;;  %v2210_v43 = vld [vmem:[%s4732_s1 + $0x50] sm:$0xff]  ;;  %v2209_v2 = vld [vmem:[%s4732_s1 + $0x48] sm:$0xff] }
 0x784   :  { %3262 = vmatpush3.msra.mxu1 %v4000_v55  ;;  %1419 = vst [vmem:[%s4734_s2 + $0x78] sm:$0x1] %v1403_v44  ;;  %v2576_v44 = vld [vmem:[%s4733_s0 + $0x60] sm:$0xff] }
 0x785   :  { %3263 = vmatprep.subr.mxu1 %v3463_v0 }
 0x786   :  { %3264 = vmatpush3.msra.mxu1 %v4007_v56 }
 0x787   :  { %3265 = vmatprep.subr.mxu1 %v3463_v0 }
 0x788   :  { %3266 = vmatpush3.msra.mxu1 %v4014_v57 }
 0x789   :  { %3267 = vmatprep.subr.mxu1 %v3463_v0 }
 0x78a   :  { %3268 = vmatpush3.msra.mxu1 %v4072_v30 }
 0x78b   :  { %3269 = vmatprep.subr.mxu1 %v3463_v0 }
 0x78c   :  { %3270 = vmatpush3.msra.mxu1 %v4080_v31 }
 0x78d   :  { %3271 = vmatprep.subr.mxu1 %v3463_v0 }
 0x78e   :  { %3272 = vmatpush3.msra.mxu1 %v4089_v32 }
 0x78f   :  { %3273 = vmatprep.subr.mxu1 %v3463_v0 }
 0x790   :  { %3274 = vmatpush3.msra.mxu1 %v4098_v33 }
 0x791   :  { %3275 = vmatprep.subr.mxu1 %v3463_v0 }
 0x792   :  { %3276 = vmatpush3.msra.mxu1 %v4107_v34 }
 0x793   :  { %3277 = vmatprep.subr.mxu1 %v3463_v0 }
 0x794   :  { %3278 = vmatpush3.msra.mxu1 %v4116_v35 }
 0x795   :  { %3279 = vmatprep.subr.mxu1 %v3463_v0 }
 0x796   :  { %3280 = vmatpush3.msra.mxu1 %v4125_v36 }
 0x797   :  { %3281 = vmatprep.subr.mxu1 %v3463_v0 }
 0x798   :  { %3282 = vmatpush3.msra.mxu1 %v4134_v37 }
 0x799   :  { %3283 = vmatprep.subr.mxu1 %v3463_v0 }
 0x79a   :  { %3284 = vmatpush3.msra.mxu1 %v4143_v38 }
 0x79b   :  { %3323 = vmatprep.subr.mxu1 %v3463_v0 }
 0x83a   :  { %v1502_v46 = vpop.f32.mrf.mxu1 }
 0x83b   :  { %v1508_v3 = vadd.f32 %v2561_v45, %v1502_v46 }
 0x83c   :  { %v3217_v4 = vpop.f32.mrf.mxu1 }
 0x83d   :  { %3449 = vtanh.f32 %v1508_v3 }
 0x84a   :  { %v3450_v5 = vpop.eup %3449 }
 0x84b   :  { %v1511_v6 = vcombine.high %v3450_v5, %v3450_v5  ;;  %v1518_v7 = vrot.slane %v3450_v5, %v3669_v26  ;;  %3251 = vmatmul.mubr.f32.vlgmr.msra.gmra.mxu0 %v3450_v5 }
 0x84c   :  { %3289 = vmatpush3.msra.mxu0 %v3974_v51  ;;  %3320 = vmatprep.mubr.msk.f32.mxu0 %vm3464_vm0, %v3463_v0 }
 0x84d   :  { %v1525_v8 = vrot.slane %v1511_v6, %v3669_v26  ;;  %v1526_v9 = vcombine.high %v1518_v7, %v1518_v7  ;;  %v1534_v10 = vrot.slane %v1518_v7, %v3669_v26  ;;  %2562 = vst.sshfl [vmem:[%s4734_s2 + $0x9] sm:$0x1 pattern:$0x73625140] %v1518_v7  ;;  %3290 = vmatprep.subr.mxu0 %v3463_v0 }
 0x84e   :  { %3291 = vmatpush3.msra.mxu0 %v3979_v52 }
 0x84f   :  { %v1527_v11 = vcombine.high %v1525_v8, %v1525_v8  ;;  %v1541_v12 = vrot.slane %v1525_v8, %v3669_v26  ;;  %v1548_v13 = vrot.slane %v1526_v9, %v3669_v26  ;;  %v1556_v14 = vcombine.high %v1534_v10, %v1534_v10  ;;  %2563 = vst.sshfl [vmem:[%s4734_s2 + $0x19] sm:$0x1 pattern:$0x73625140] %v1526_v9 }
 0x850   :  { %2564 = vst.sshfl [vmem:[%s4734_s2 + $0x49] sm:$0x1 pattern:$0x73625140] %v1525_v8  ;;  %3292 = vmatprep.subr.mxu0 %v3463_v0 }
 0x851   :  { %3293 = vmatpush3.msra.mxu0 %v3986_v53  ;;  %v1555_v15 = vrot.slane %v1527_v11, %v3669_v26  ;;  %v1557_v16 = vcombine.high %v1541_v12, %v1541_v12  ;;  %v1558_v47 = vcombine.high %v1548_v13, %v1548_v13  ;;  %1570 = vst [vmem:[%s4734_s2 + $0x29] sm:$0x1] %v1556_v14  ;;  %2565 = vst.sshfl [vmem:[%s4734_s2 + $0x59] sm:$0x1 pattern:$0x73625140] %v1527_v11 }
 0x852   :  { %3294 = vmatprep.subr.mxu0 %v3463_v0 }
 0x853   :  { %3295 = vmatpush3.msra.mxu0 %v3993_v54  ;;  %v1559_v48 = vcombine.high %v1555_v15, %v1555_v15  ;;  %1571 = vst [vmem:[%s4734_s2 + $0x39] sm:$0x1] %v1558_v47  ;;  %1574 = vst [vmem:[%s4734_s2 + $0x69] sm:$0x1] %v1557_v16 }
 0x854   :  { %3296 = vmatprep.subr.mxu0 %v3463_v0 }
 0x855   :  { %3297 = vmatpush3.msra.mxu0 %v4000_v55  ;;  %1575 = vst [vmem:[%s4734_s2 + $0x79] sm:$0x1] %v1559_v48  ;;  %v2208_v48 = vld [vmem:[%s4732_s1 + $0x40] sm:$0xff] }
 0x856   :  { %3298 = vmatprep.subr.mxu0 %v3463_v0 }
 0x857   :  { %3299 = vmatpush3.msra.mxu0 %v4007_v56 }
 0x858   :  { %3300 = vmatprep.subr.mxu0 %v3463_v0 }
 0x859   :  { %3301 = vmatpush3.msra.mxu0 %v4014_v57 }
 0x85a   :  { %3302 = vmatprep.subr.mxu0 %v3463_v0 }
 0x85b   :  { %3303 = vmatpush3.msra.mxu0 %v4072_v30 }
 0x85c   :  { %3304 = vmatprep.subr.mxu0 %v3463_v0 }
 0x85d   :  { %3305 = vmatpush3.msra.mxu0 %v4080_v31 }
 0x85e   :  { %3306 = vmatprep.subr.mxu0 %v3463_v0 }
 0x85f   :  { %3307 = vmatpush3.msra.mxu0 %v4089_v32 }
 0x860   :  { %3308 = vmatprep.subr.mxu0 %v3463_v0 }
 0x861   :  { %3309 = vmatpush3.msra.mxu0 %v4098_v33 }
 0x862   :  { %3310 = vmatprep.subr.mxu0 %v3463_v0 }
 0x863   :  { %3311 = vmatpush3.msra.mxu0 %v4107_v34 }
 0x864   :  { %3312 = vmatprep.subr.mxu0 %v3463_v0 }
 0x865   :  { %3313 = vmatpush3.msra.mxu0 %v4116_v35 }
 0x866   :  { %3314 = vmatprep.subr.mxu0 %v3463_v0 }
 0x867   :  { %3315 = vmatpush3.msra.mxu0 %v4125_v36 }
 0x868   :  { %3316 = vmatprep.subr.mxu0 %v3463_v0 }
 0x869   :  { %3317 = vmatpush3.msra.mxu0 %v4134_v37 }
 0x86a   :  { %3318 = vmatprep.subr.mxu0 %v3463_v0 }
 0x86b   :  { %3319 = vmatpush3.msra.mxu0 %v4143_v38 }
 0x86c   :  { %3358 = vmatprep.subr.mxu0 %v3463_v0 }
 0x90b   :  { %v1658_v50 = vpop.f32.mrf.mxu0 }
 0x90c   :  { %v1664_v58 = vadd.f32 %v2566_v49, %v1658_v50  ;;  %v2207_v49 = vld [vmem:[%s4732_s1 + $0x38] sm:$0xff]  ;;  %v2206_v50 = vld [vmem:[%s4732_s1 + $0x30] sm:$0xff] }
 0x90d   :  { %v3252_v59 = vpop.f32.mrf.mxu0 }
 0x90e   :  { %3451 = vtanh.f32 %v1664_v58  ;;  %v2205_v58 = vld [vmem:[%s4732_s1 + $0x28] sm:$0xff]  ;;  %v2204_v59 = vld [vmem:[%s4732_s1 + $0x20] sm:$0xff] }
 0x91b   :  { %v3452_v60 = vpop.eup %3451 }
 0x91c   :  { %v1667_v61 = vcombine.high %v3452_v60, %v3452_v60  ;;  %v1674_v62 = vrot.slane %v3452_v60, %v3669_v26  ;;  %3286 = vmatmul.mubr.f32.vlgmr.msra.gmra.mxu1 %v3452_v60  ;;  %v2203_v60 = vld [vmem:[%s4732_s1 + $0x18] sm:$0xff] }
 0x91d   :  { %3324 = vmatpush3.msra.mxu1 %v3974_v51  ;;  %3355 = vmatprep.mubr.msk.f32.mxu1 %vm3464_vm0, %v3463_v0 }
 0x91e   :  { %v1681_v63 = vrot.slane %v1667_v61, %v3669_v26  ;;  %v1682_v17 = vcombine.high %v1674_v62, %v1674_v62  ;;  %v1690_v18 = vrot.slane %v1674_v62, %v3669_v26  ;;  %2567 = vst.sshfl [vmem:[%s4734_s2 + $0xa] sm:$0x1 pattern:$0x73625140] %v1674_v62  ;;  %3325 = vmatprep.subr.mxu1 %v3463_v0  ;;  %v2202_v61 = vld [vmem:[%s4732_s1 + $0x10] sm:$0xff]  ;;  %v2201_v62 = vld [vmem:[%s4732_s1 + $0x8] sm:$0xff] }
 0x91f   :  { %3326 = vmatpush3.msra.mxu1 %v3979_v52 }
 0x920   :  { %v1683_v19 = vcombine.high %v1681_v63, %v1681_v63  ;;  %v1697_v20 = vrot.slane %v1681_v63, %v3669_v26  ;;  %v1704_v51 = vrot.slane %v1682_v17, %v3669_v26  ;;  %v1712_v21 = vcombine.high %v1690_v18, %v1690_v18  ;;  %2568 = vst.sshfl [vmem:[%s4734_s2 + $0x1a] sm:$0x1 pattern:$0x73625140] %v1682_v17  ;;  %v2581_v17 = vld [vmem:[%s4733_s0 + $0x68] sm:$0xff] }
 0x921   :  { %2569 = vst.sshfl [vmem:[%s4734_s2 + $0x4a] sm:$0x1 pattern:$0x73625140] %v1681_v63  ;;  %3327 = vmatprep.subr.mxu1 %v3463_v0  ;;  %v2200_v63 = vld [vmem:[%s4732_s1] sm:$0xff] }
 0x922   :  { %3328 = vmatpush3.msra.mxu1 %v3986_v53  ;;  %v1711_v52 = vrot.slane %v1683_v19, %v3669_v26  ;;  %v1713_v22 = vcombine.high %v1697_v20, %v1697_v20  ;;  %v1714_v23 = vcombine.high %v1704_v51, %v1704_v51  ;;  %1726 = vst [vmem:[%s4734_s2 + $0x2a] sm:$0x1] %v1712_v21  ;;  %2570 = vst.sshfl [vmem:[%s4734_s2 + $0x5a] sm:$0x1 pattern:$0x73625140] %v1683_v19 }
 0x923   :  { %3329 = vmatprep.subr.mxu1 %v3463_v0  ;;  %v2571_v53 = vld [vmem:[%s4733_s0 + $0x58] sm:$0xff] }
 0x924   :  { %3330 = vmatpush3.msra.mxu1 %v3993_v54  ;;  %v1715_v24 = vcombine.high %v1711_v52, %v1711_v52  ;;  %1727 = vst [vmem:[%s4734_s2 + $0x3a] sm:$0x1] %v1714_v23  ;;  %1730 = vst [vmem:[%s4734_s2 + $0x6a] sm:$0x1] %v1713_v22 }
 0x925   :  { %3331 = vmatprep.subr.mxu1 %v3463_v0 }
 0x926   :  { %3332 = vmatpush3.msra.mxu1 %v4000_v55  ;;  %1731 = vst [vmem:[%s4734_s2 + $0x7a] sm:$0x1] %v1715_v24 }
 0x927   :  { %3333 = vmatprep.subr.mxu1 %v3463_v0 }
 0x928   :  { %3334 = vmatpush3.msra.mxu1 %v4007_v56 }
 0x929   :  { %3335 = vmatprep.subr.mxu1 %v3463_v0 }
 0x92a   :  { %3336 = vmatpush3.msra.mxu1 %v4014_v57 }
 0x92b   :  { %3337 = vmatprep.subr.mxu1 %v3463_v0 }
 0x92c   :  { %3338 = vmatpush3.msra.mxu1 %v4072_v30 }
 0x92d   :  { %3339 = vmatprep.subr.mxu1 %v3463_v0 }
 0x92e   :  { %3340 = vmatpush3.msra.mxu1 %v4080_v31 }
 0x92f   :  { %3341 = vmatprep.subr.mxu1 %v3463_v0 }
 0x930   :  { %3342 = vmatpush3.msra.mxu1 %v4089_v32 }
 0x931   :  { %3343 = vmatprep.subr.mxu1 %v3463_v0 }
 0x932   :  { %3344 = vmatpush3.msra.mxu1 %v4098_v33 }
 0x933   :  { %3345 = vmatprep.subr.mxu1 %v3463_v0 }
 0x934   :  { %3346 = vmatpush3.msra.mxu1 %v4107_v34 }
 0x935   :  { %3347 = vmatprep.subr.mxu1 %v3463_v0 }
 0x936   :  { %3348 = vmatpush3.msra.mxu1 %v4116_v35 }
 0x937   :  { %3349 = vmatprep.subr.mxu1 %v3463_v0 }
 0x938   :  { %3350 = vmatpush3.msra.mxu1 %v4125_v36 }
 0x939   :  { %3351 = vmatprep.subr.mxu1 %v3463_v0 }
 0x93a   :  { %3352 = vmatpush3.msra.mxu1 %v4134_v37 }
 0x93b   :  { %3353 = vmatprep.subr.mxu1 %v3463_v0 }
 0x93c   :  { %3354 = vmatpush3.msra.mxu1 %v4143_v38 }
 0x93d   :  { %3393 = vmatprep.subr.mxu1 %v3463_v0 }
 0x9dc   :  { %v1814_v54 = vpop.f32.mrf.mxu1 }
 0x9dd   :  { %v1820_v55 = vadd.f32 %v2571_v53, %v1814_v54 }
 0x9de   :  { %v3287_v56 = vpop.f32.mrf.mxu1 }
 0x9df   :  { %3453 = vtanh.f32 %v1820_v55 }
 0x9ec   :  { %v3454_v57 = vpop.eup %3453 }
 0x9ed   :  { %v1823_v30 = vcombine.high %v3454_v57, %v3454_v57  ;;  %v1830_v31 = vrot.slane %v3454_v57, %v3669_v26  ;;  %3321 = vmatmul.mubr.f32.vlgmr.msra.gmra.mxu0 %v3454_v57 }
 0x9ee   :  { %3390 = vmatprep.mubr.msk.f32.mxu0 %vm3464_vm0, %v3463_v0  ;;  %3359 = vmatpush3.msra.mxu0 %v2215_v39 }
 0x9ef   :  { %v1837_v32 = vrot.slane %v1823_v30, %v3669_v26  ;;  %v1838_v33 = vcombine.high %v1830_v31, %v1830_v31  ;;  %v1846_v34 = vrot.slane %v1830_v31, %v3669_v26  ;;  %2572 = vst.sshfl [vmem:[%s4734_s2 + $0xb] sm:$0x1 pattern:$0x73625140] %v1830_v31  ;;  %3360 = vmatprep.subr.mxu0 %v3463_v0 }
 0x9f0   :  { %3361 = vmatpush3.msra.mxu0 %v2214_v40 }
 0x9f1   :  { %v1839_v35 = vcombine.high %v1837_v32, %v1837_v32  ;;  %v1853_v36 = vrot.slane %v1837_v32, %v3669_v26  ;;  %v1860_v37 = vrot.slane %v1838_v33, %v3669_v26  ;;  %v1868_v38 = vcombine.high %v1846_v34, %v1846_v34  ;;  %2573 = vst.sshfl [vmem:[%s4734_s2 + $0x1b] sm:$0x1 pattern:$0x73625140] %v1838_v33 }
 0x9f2   :  { %2574 = vst.sshfl [vmem:[%s4734_s2 + $0x4b] sm:$0x1 pattern:$0x73625140] %v1837_v32  ;;  %3362 = vmatprep.subr.mxu0 %v3463_v0  ;;  %v2586_v32 = vld [vmem:[%s4733_s0 + $0x70] sm:$0xff] }
 0x9f3   :  { %v1867_v25 = vrot.slane %v1839_v35, %v3669_v26  ;;  %v1869_v27 = vcombine.high %v1853_v36, %v1853_v36  ;;  %v1870_v28 = vcombine.high %v1860_v37, %v1860_v37  ;;  %1882 = vst [vmem:[%s4734_s2 + $0x2b] sm:$0x1] %v1868_v38  ;;  %2575 = vst.sshfl [vmem:[%s4734_s2 + $0x5b] sm:$0x1 pattern:$0x73625140] %v1839_v35  ;;  %3363 = vmatpush3.msra.mxu0 %v2213_v41 }
 0x9f4   :  { %3364 = vmatprep.subr.mxu0 %v3463_v0 }
 0x9f5   :  { %v1871_v29 = vcombine.high %v1867_v25, %v1867_v25  ;;  %1883 = vst [vmem:[%s4734_s2 + $0x3b] sm:$0x1] %v1870_v28  ;;  %1886 = vst [vmem:[%s4734_s2 + $0x6b] sm:$0x1] %v1869_v27  ;;  %3365 = vmatpush3.msra.mxu0 %v2212_v42 }
 0x9f6   :  { %3366 = vmatprep.subr.mxu0 %v3463_v0 }
 0x9f7   :  { %1887 = vst [vmem:[%s4734_s2 + $0x7b] sm:$0x1] %v1871_v29  ;;  %3367 = vmatpush3.msra.mxu0 %v2211_v1 }
 0x9f8   :  { %3368 = vmatprep.subr.mxu0 %v3463_v0 }
 0x9f9   :  { %3369 = vmatpush3.msra.mxu0 %v2210_v43 }
 0x9fa   :  { %3370 = vmatprep.subr.mxu0 %v3463_v0 }
 0x9fb   :  { %3371 = vmatpush3.msra.mxu0 %v2209_v2 }
 0x9fc   :  { %3372 = vmatprep.subr.mxu0 %v3463_v0 }
 0x9fd   :  { %3373 = vmatpush3.msra.mxu0 %v2208_v48 }
 0x9fe   :  { %3374 = vmatprep.subr.mxu0 %v3463_v0 }
 0x9ff   :  { %3375 = vmatpush3.msra.mxu0 %v2207_v49 }
 0xa00   :  { %3376 = vmatprep.subr.mxu0 %v3463_v0 }
 0xa01   :  { %3377 = vmatpush3.msra.mxu0 %v2206_v50 }
 0xa02   :  { %3378 = vmatprep.subr.mxu0 %v3463_v0 }
 0xa03   :  { %3379 = vmatpush3.msra.mxu0 %v2205_v58 }
 0xa04   :  { %3380 = vmatprep.subr.mxu0 %v3463_v0 }
 0xa05   :  { %3381 = vmatpush3.msra.mxu0 %v2204_v59 }
 0xa06   :  { %3382 = vmatprep.subr.mxu0 %v3463_v0 }
 0xa07   :  { %3383 = vmatpush3.msra.mxu0 %v2203_v60 }
 0xa08   :  { %3384 = vmatprep.subr.mxu0 %v3463_v0 }
 0xa09   :  { %3385 = vmatpush3.msra.mxu0 %v2202_v61 }
 0xa0a   :  { %3386 = vmatprep.subr.mxu0 %v3463_v0 }
 0xa0b   :  { %3387 = vmatpush3.msra.mxu0 %v2201_v62 }
 0xa0c   :  { %3388 = vmatprep.subr.mxu0 %v3463_v0 }
 0xa0d   :  { %3389 = vmatpush3.msra.mxu0 %v2200_v63 }
 0xaad   :  { %v1970_v45 = vpop.f32.mrf.mxu0 }
 0xaae   :  { %v1976_v46 = vadd.f32 %v2576_v44, %v1970_v45  ;;  %v2591_v44 = vld [vmem:[%s4733_s0 + $0x78] sm:$0xff] }
 0xaaf   :  { %v3322_v3 = vpop.f32.mrf.mxu0 }
 0xab0   :  { %3455 = vtanh.f32 %v1976_v46 }
 0xabd   :  { %v3456_v4 = vpop.eup %3455 }
 0xabe   :  { %v1979_v5 = vcombine.high %v3456_v4, %v3456_v4  ;;  %v1986_v6 = vrot.slane %v3456_v4, %v3669_v26  ;;  %3356 = vmatmul.mubr.f32.vlgmr.msra.gmra.mxu1 %v3456_v4 }
 0xabf   :  { %3394 = vmatpush3.msra.mxu1 %v2215_v39  ;;  %3425 = vmatprep.mubr.msk.f32.mxu1 %vm3464_vm0, %v3463_v0 }
 0xac0   :  { %v1993_v7 = vrot.slane %v1979_v5, %v3669_v26  ;;  %v1994_v8 = vcombine.high %v1986_v6, %v1986_v6  ;;  %v2002_v9 = vrot.slane %v1986_v6, %v3669_v26  ;;  %2577 = vst.sshfl [vmem:[%s4734_s2 + $0xc] sm:$0x1 pattern:$0x73625140] %v1986_v6  ;;  %3395 = vmatprep.subr.mxu1 %v3463_v0 }
 0xac1   :  { %3396 = vmatpush3.msra.mxu1 %v2214_v40 }
 0xac2   :  { %v1995_v10 = vcombine.high %v1993_v7, %v1993_v7  ;;  %v2009_v11 = vrot.slane %v1993_v7, %v3669_v26  ;;  %v2016_v12 = vrot.slane %v1994_v8, %v3669_v26  ;;  %v2024_v13 = vcombine.high %v2002_v9, %v2002_v9  ;;  %2578 = vst.sshfl [vmem:[%s4734_s2 + $0x1c] sm:$0x1 pattern:$0x73625140] %v1994_v8 }
 0xac3   :  { %2579 = vst.sshfl [vmem:[%s4734_s2 + $0x4c] sm:$0x1 pattern:$0x73625140] %v1993_v7  ;;  %3397 = vmatprep.subr.mxu1 %v3463_v0 }
 0xac4   :  { %3398 = vmatpush3.msra.mxu1 %v2213_v41  ;;  %v2023_v14 = vrot.slane %v1995_v10, %v3669_v26  ;;  %v2025_v15 = vcombine.high %v2009_v11, %v2009_v11  ;;  %v2026_v16 = vcombine.high %v2016_v12, %v2016_v12  ;;  %2038 = vst [vmem:[%s4734_s2 + $0x2c] sm:$0x1] %v2024_v13  ;;  %2580 = vst.sshfl [vmem:[%s4734_s2 + $0x5c] sm:$0x1 pattern:$0x73625140] %v1995_v10 }
 0xac5   :  { %3399 = vmatprep.subr.mxu1 %v3463_v0 }
 0xac6   :  { %3400 = vmatpush3.msra.mxu1 %v2212_v42  ;;  %v2027_v47 = vcombine.high %v2023_v14, %v2023_v14  ;;  %2039 = vst [vmem:[%s4734_s2 + $0x3c] sm:$0x1] %v2026_v16  ;;  %2042 = vst [vmem:[%s4734_s2 + $0x6c] sm:$0x1] %v2025_v15 }
 0xac7   :  { %3401 = vmatprep.subr.mxu1 %v3463_v0 }
 0xac8   :  { %3402 = vmatpush3.msra.mxu1 %v2211_v1  ;;  %2043 = vst [vmem:[%s4734_s2 + $0x7c] sm:$0x1] %v2027_v47 }
 0xac9   :  { %3403 = vmatprep.subr.mxu1 %v3463_v0 }
 0xaca   :  { %3404 = vmatpush3.msra.mxu1 %v2210_v43 }
 0xacb   :  { %3405 = vmatprep.subr.mxu1 %v3463_v0 }
 0xacc   :  { %3406 = vmatpush3.msra.mxu1 %v2209_v2 }
 0xacd   :  { %3407 = vmatprep.subr.mxu1 %v3463_v0 }
 0xace   :  { %3408 = vmatpush3.msra.mxu1 %v2208_v48 }
 0xacf   :  { %3409 = vmatprep.subr.mxu1 %v3463_v0 }
 0xad0   :  { %3410 = vmatpush3.msra.mxu1 %v2207_v49 }
 0xad1   :  { %3411 = vmatprep.subr.mxu1 %v3463_v0 }
 0xad2   :  { %3412 = vmatpush3.msra.mxu1 %v2206_v50 }
 0xad3   :  { %3413 = vmatprep.subr.mxu1 %v3463_v0 }
 0xad4   :  { %3414 = vmatpush3.msra.mxu1 %v2205_v58 }
 0xad5   :  { %3415 = vmatprep.subr.mxu1 %v3463_v0 }
 0xad6   :  { %3416 = vmatpush3.msra.mxu1 %v2204_v59 }
 0xad7   :  { %3417 = vmatprep.subr.mxu1 %v3463_v0 }
 0xad8   :  { %3418 = vmatpush3.msra.mxu1 %v2203_v60 }
 0xad9   :  { %3419 = vmatprep.subr.mxu1 %v3463_v0 }
 0xada   :  { %3420 = vmatpush3.msra.mxu1 %v2202_v61 }
 0xadb   :  { %3421 = vmatprep.subr.mxu1 %v3463_v0 }
 0xadc   :  { %3422 = vmatpush3.msra.mxu1 %v2201_v62 }
 0xadd   :  { %3423 = vmatprep.subr.mxu1 %v3463_v0 }
 0xade   :  { %3424 = vmatpush3.msra.mxu1 %v2200_v63 }
 0xb7e   :  { %v2126_v18 = vpop.f32.mrf.mxu1 }
 0xb7f   :  { %v2132_v19 = vadd.f32 %v2581_v17, %v2126_v18 }
 0xb80   :  { %v3357_v20 = vpop.f32.mrf.mxu1 }
 0xb81   :  { %3457 = vtanh.f32 %v2132_v19 }
 0xb8e   :  { %v3458_v51 = vpop.eup %3457 }
 0xb8f   :  { %v2135_v21 = vcombine.high %v3458_v51, %v3458_v51  ;;  %v2142_v52 = vrot.slane %v3458_v51, %v3669_v26  ;;  %3391 = vmatmul.mubr.f32.vlgmr.msra.gmra.mxu0 %v3458_v51 }
 0xb91   :  { %v2149_v22 = vrot.slane %v2135_v21, %v3669_v26  ;;  %v2150_v23 = vcombine.high %v2142_v52, %v2142_v52  ;;  %v2158_v0 = vrot.slane %v2142_v52, %v3669_v26  ;;  %2582 = vst.sshfl [vmem:[%s4734_s2 + $0xd] sm:$0x1 pattern:$0x73625140] %v2142_v52 }
 0xb93   :  { %v2151_v24 = vcombine.high %v2149_v22, %v2149_v22  ;;  %v2165_v53 = vrot.slane %v2149_v22, %v3669_v26  ;;  %v2172_v54 = vrot.slane %v2150_v23, %v3669_v26  ;;  %v2180_v55 = vcombine.high %v2158_v0, %v2158_v0  ;;  %2583 = vst.sshfl [vmem:[%s4734_s2 + $0x1d] sm:$0x1 pattern:$0x73625140] %v2150_v23 }
 0xb94   :  { %2584 = vst.sshfl [vmem:[%s4734_s2 + $0x4d] sm:$0x1 pattern:$0x73625140] %v2149_v22 }
 0xb95   :  { %v2179_v56 = vrot.slane %v2151_v24, %v3669_v26  ;;  %v2181_v57 = vcombine.high %v2165_v53, %v2165_v53  ;;  %v2182_v30 = vcombine.high %v2172_v54, %v2172_v54  ;;  %2194 = vst [vmem:[%s4734_s2 + $0x2d] sm:$0x1] %v2180_v55  ;;  %2585 = vst.sshfl [vmem:[%s4734_s2 + $0x5d] sm:$0x1 pattern:$0x73625140] %v2151_v24 }
 0xb97   :  { %v2183_v31 = vcombine.high %v2179_v56, %v2179_v56  ;;  %2195 = vst [vmem:[%s4734_s2 + $0x3d] sm:$0x1] %v2182_v30  ;;  %2198 = vst [vmem:[%s4734_s2 + $0x6d] sm:$0x1] %v2181_v57 }
 0xb99   :  { %2199 = vst [vmem:[%s4734_s2 + $0x7d] sm:$0x1] %v2183_v31 }
 0xc4f   :  { %v2282_v33 = vpop.f32.mrf.mxu0 }
 0xc50   :  { %v2288_v34 = vadd.f32 %v2586_v32, %v2282_v33 }
 0xc51   :  { %v3392_v35 = vpop.f32.mrf.mxu0 }
 0xc52   :  { %3459 = vtanh.f32 %v2288_v34 }
 0xc5f   :  { %v3460_v36 = vpop.eup %3459 }
 0xc60   :  { %v2291_v37 = vcombine.high %v3460_v36, %v3460_v36  ;;  %v2298_v38 = vrot.slane %v3460_v36, %v3669_v26  ;;  %3426 = vmatmul.mubr.f32.vlgmr.msra.gmra.mxu1 %v3460_v36 }
 0xc62   :  { %v2305_v25 = vrot.slane %v2291_v37, %v3669_v26  ;;  %v2306_v27 = vcombine.high %v2298_v38, %v2298_v38  ;;  %v2314_v28 = vrot.slane %v2298_v38, %v3669_v26  ;;  %2587 = vst.sshfl [vmem:[%s4734_s2 + $0xe] sm:$0x1 pattern:$0x73625140] %v2298_v38 }
 0xc64   :  { %v2307_v29 = vcombine.high %v2305_v25, %v2305_v25  ;;  %v2321_v39 = vrot.slane %v2305_v25, %v3669_v26  ;;  %v2328_v40 = vrot.slane %v2306_v27, %v3669_v26  ;;  %v2336_v41 = vcombine.high %v2314_v28, %v2314_v28  ;;  %2588 = vst.sshfl [vmem:[%s4734_s2 + $0x1e] sm:$0x1 pattern:$0x73625140] %v2306_v27 }
 0xc65   :  { %2589 = vst.sshfl [vmem:[%s4734_s2 + $0x4e] sm:$0x1 pattern:$0x73625140] %v2305_v25 }
 0xc66   :  { %v2335_v42 = vrot.slane %v2307_v29, %v3669_v26  ;;  %v2337_v1 = vcombine.high %v2321_v39, %v2321_v39  ;;  %v2338_v43 = vcombine.high %v2328_v40, %v2328_v40  ;;  %2350 = vst [vmem:[%s4734_s2 + $0x2e] sm:$0x1] %v2336_v41  ;;  %2590 = vst.sshfl [vmem:[%s4734_s2 + $0x5e] sm:$0x1 pattern:$0x73625140] %v2307_v29 }
 0xc68   :  { %v2339_v2 = vcombine.high %v2335_v42, %v2335_v42  ;;  %2351 = vst [vmem:[%s4734_s2 + $0x3e] sm:$0x1] %v2338_v43  ;;  %2354 = vst [vmem:[%s4734_s2 + $0x6e] sm:$0x1] %v2337_v1 }
 0xc6a   :  { %2355 = vst [vmem:[%s4734_s2 + $0x7e] sm:$0x1] %v2339_v2 }
 0xd20   :  { %v2438_v45 = vpop.f32.mrf.mxu1 }
 0xd21   :  { %v2444_v46 = vadd.f32 %v2591_v44, %v2438_v45 }
 0xd22   :  { %v3427_v3 = vpop.f32.mrf.mxu1 }
 0xd23   :  { %3461 = vtanh.f32 %v2444_v46 }
 0xd30   :  { %v3462_v4 = vpop.eup %3461 }
 0xd31   :  { %v2447_v5 = vcombine.high %v3462_v4, %v3462_v4  ;;  %v2454_v6 = vrot.slane %v3462_v4, %v3669_v26 }
 0xd33   :  { %v2461_v7 = vrot.slane %v2447_v5, %v3669_v26  ;;  %v2462_v8 = vcombine.high %v2454_v6, %v2454_v6  ;;  %v2470_v9 = vrot.slane %v2454_v6, %v3669_v26  ;;  %2592 = vst.sshfl [vmem:[%s4734_s2 + $0xf] sm:$0x1 pattern:$0x73625140] %v2454_v6 }
 0xd35   :  { %v2463_v10 = vcombine.high %v2461_v7, %v2461_v7  ;;  %v2477_v11 = vrot.slane %v2461_v7, %v3669_v26  ;;  %v2484_v12 = vrot.slane %v2462_v8, %v3669_v26  ;;  %v2492_v13 = vcombine.high %v2470_v9, %v2470_v9  ;;  %2593 = vst.sshfl [vmem:[%s4734_s2 + $0x1f] sm:$0x1 pattern:$0x73625140] %v2462_v8 }
 0xd36   :  { %2594 = vst.sshfl [vmem:[%s4734_s2 + $0x4f] sm:$0x1 pattern:$0x73625140] %v2461_v7 }
 0xd37   :  { %v2491_v14 = vrot.slane %v2463_v10, %v3669_v26  ;;  %v2493_v15 = vcombine.high %v2477_v11, %v2477_v11  ;;  %v2494_v16 = vcombine.high %v2484_v12, %v2484_v12  ;;  %2506 = vst [vmem:[%s4734_s2 + $0x2f] sm:$0x1] %v2492_v13  ;;  %2595 = vst.sshfl [vmem:[%s4734_s2 + $0x5f] sm:$0x1 pattern:$0x73625140] %v2463_v10 }
 0xd39   :  { %v2495_v47 = vcombine.high %v2491_v14, %v2491_v14  ;;  %2507 = vst [vmem:[%s4734_s2 + $0x3f] sm:$0x1] %v2494_v16  ;;  %2510 = vst [vmem:[%s4734_s2 + $0x6f] sm:$0x1] %v2493_v15 }
 0xd3b   :  { %2511 = vst [vmem:[%s4734_s2 + $0x7f] sm:$0x1] %v2495_v47 }

</bundles_post_ra>
